<compile_context>
chip_gen: v5e
topology: v5e:2x2
jax: 0.10.0
libtpu: 0.0.40
codegen_flags: <defaults>
</compile_context>

<pallas_src>
import jax
import jax.numpy as jnp
import numpy as np
from jax.experimental import pallas as pl
from jax.experimental.pallas import tpu as pltpu

# Model / problem sizes (small, consistent with the module's forward).
B, T, D_IN = 2, 8, 4          # batch, sequence length, input features
HID, OUT = 32, 3              # hidden_size, output_size
NH = 2                        # num_heads
HD = HID // NH                # head dim


def lstm_attn_kernel(x_ref,                     # (T*B, D_IN)   t-major rows (row = t*B + b)
                     w_ih_ref, w_hh_ref,        # (D_IN, 4H), (H, 4H)   (pre-transposed)
                     b4_ref,                    # (1, 4H)  = b_ih + b_hh
                     w_q_ref, b_q_ref,          # (H, H), (1, H)   (1/sqrt(HD) folded in)
                     w_k_ref, b_k_ref,          # (H, H), (1, H)
                     w_v_ref, b_v_ref,          # (H, H), (1, H)
                     w_cf_ref, b_cf_ref,        # (H, OUT), (1, OUT)  (out_proj + fc folded)
                     out_ref,                   # (B, OUT)
                     lstm_ref):                 # scratch VMEM (B*T, H), b-major rows
    # ---- hoisted input projection: one matmul for all timesteps ----
    xp = jnp.dot(x_ref[...], w_ih_ref[...],
                 preferred_element_type=jnp.float32) + b4_ref[...]        # (T*B, 4H)
    w_hh = w_hh_ref[...]

    # ---- fully unrolled LSTM recurrence (PyTorch gate order: i, f, g, o) ----
    h = jnp.zeros((B, HID), jnp.float32)
    c = jnp.zeros((B, HID), jnp.float32)
    for t in range(T):
        gates = xp[t * B:(t + 1) * B, :] + jnp.dot(
            h, w_hh, preferred_element_type=jnp.float32)                  # (B, 4H)
        sig = jax.nn.sigmoid(gates)            # one wide EUP op over all 4 gate groups
        th = jnp.tanh(gates)                   # one wide EUP op
        i = sig[:, 0 * HID:1 * HID]
        f = sig[:, 1 * HID:2 * HID]
        g = th[:, 2 * HID:3 * HID]
        o = sig[:, 3 * HID:4 * HID]
        c = f * c + i * g
        h = o * jnp.tanh(c)
        # Store h_t b-major (row = b*T + t) so per-batch K/V slices are 8-row aligned.
        for bb in range(B):
            lstm_ref[pl.ds(bb * T + t, 1), :] = h[bb:bb + 1, :]

    L = lstm_ref[...]                                                     # (B*T, H)

    # ---- attention projections: Q only for the last timestep, K/V as 2D matmuls ----
    q = jnp.dot(h, w_q_ref[...], preferred_element_type=jnp.float32) + b_q_ref[...]   # (B, H), pre-scaled
    k = jnp.dot(L, w_k_ref[...], preferred_element_type=jnp.float32) + b_k_ref[...]   # (B*T, H)
    v = jnp.dot(L, w_v_ref[...], preferred_element_type=jnp.float32) + b_v_ref[...]   # (B*T, H)

    # ---- attention (last query position only — identical to attn_output[:, -1, :]) ----
    # Pure VPU/XLU: broadcast-multiply, per-head lane-group reduce, one joint softmax
    # over (T, NH) per batch, then head-wise weighted sum of V.
    rows = []
    for bb in range(B):
        kb = k[bb * T:(bb + 1) * T, :]         # (T, H), 8-row aligned sublane slice
        vb = v[bb * T:(bb + 1) * T, :]         # (T, H)
        qb = q[bb:bb + 1, :]                   # (1, H)
        prod = qb * kb                         # (T, H)
        s = jnp.concatenate(
            [jnp.sum(prod[:, hh * HD:(hh + 1) * HD], axis=1, keepdims=True)
             for hh in range(NH)], axis=1)                                # (T, NH) scores
        m = jnp.max(s, axis=0, keepdims=True)                             # (1, NH)
        e = jnp.exp(s - m)                                                # one EUP op, both heads
        p = e / jnp.sum(e, axis=0, keepdims=True)                         # (T, NH) softmax over T
        ctx_b = jnp.concatenate(
            [jnp.sum(p[:, hh:hh + 1] * vb[:, hh * HD:(hh + 1) * HD],
                     axis=0, keepdims=True) for hh in range(NH)], axis=1)  # (1, H)
        rows.append(ctx_b)
    ctx = jnp.concatenate(rows, axis=0)                                   # (B, H)

    # ---- fused MHA out-projection + final Linear ----
    out_ref[...] = jnp.dot(ctx, w_cf_ref[...],
                           preferred_element_type=jnp.float32) + b_cf_ref[...]


def lstm_attention_forward(x, params):
    """x: (B, T, D_IN) float32, batch-first like the PyTorch module."""
    x_tb = jnp.transpose(x, (1, 0, 2)).reshape(T * B, D_IN).astype(jnp.float32)  # t-major rows

    scale = 1.0 / (HD ** 0.5)
    qw, kw, vw = jnp.split(params['in_proj_w'], 3, axis=0)     # each (H, H)
    qb, kb, vb = jnp.split(params['in_proj_b'], 3)             # each (H,)
    # Fold out_proj and fc into one (H, OUT) matmul + bias (exact).
    w_cf = params['out_proj_w'].T @ params['fc_w'].T           # (H, OUT)
    b_cf = params['out_proj_b'] @ params['fc_w'].T + params['fc_b']   # (OUT,)

    ins = [
        x_tb,
        params['w_ih'].T,                                      # (D_IN, 4H)
        params['w_hh'].T,                                      # (H, 4H)
        (params['b_ih'] + params['b_hh'])[None, :],            # (1, 4H)
        qw.T * scale, (qb * scale)[None, :],                   # (H, H), (1, H)
        kw.T, kb[None, :],
        vw.T, vb[None, :],
        w_cf, b_cf[None, :],
    ]
    vmem = pl.BlockSpec(memory_space=pltpu.MemorySpace.VMEM)
    return pl.pallas_call(
        lstm_attn_kernel,
        out_shape=jax.ShapeDtypeStruct((B, OUT), jnp.float32),
        in_specs=[vmem] * len(ins),
        out_specs=vmem,
        scratch_shapes=[pltpu.VMEM((B * T, HID), jnp.float32)],
    )(*ins)


def init_params(key):
    ks = jax.random.split(key, 8)
    s = 1.0 / (HID ** 0.5)

    def u(k, shape):
        return jax.random.uniform(k, shape, jnp.float32, -s, s)

    return {
        'w_ih': u(ks[0], (4 * HID, D_IN)),
        'w_hh': u(ks[1], (4 * HID, HID)),
        'b_ih': u(ks[2], (4 * HID,)),
        'b_hh': u(ks[3], (4 * HID,)),
        'in_proj_w': u(ks[4], (3 * HID, HID)),
        'in_proj_b': jnp.zeros((3 * HID,), jnp.float32),
        'out_proj_w': u(ks[5], (HID, HID)),
        'out_proj_b': jnp.zeros((HID,), jnp.float32),
        'fc_w': u(ks[6], (OUT, HID)),
        'fc_b': u(ks[7], (OUT,)),
    }


def ref_forward(x, p):
    """Pure-JAX reference reproducing the PyTorch forward (eval mode, no dropout)."""
    h = jnp.zeros((B, HID), jnp.float32)
    c = jnp.zeros((B, HID), jnp.float32)
    outs = []
    for t in range(T):
        gates = x[:, t, :] @ p['w_ih'].T + p['b_ih'] + h @ p['w_hh'].T + p['b_hh']
        i = jax.nn.sigmoid(gates[:, :HID])
        f = jax.nn.sigmoid(gates[:, HID:2 * HID])
        g = jnp.tanh(gates[:, 2 * HID:3 * HID])
        o = jax.nn.sigmoid(gates[:, 3 * HID:])
        c = f * c + i * g
        h = o * jnp.tanh(c)
        outs.append(h)
    lstm = jnp.stack(outs, axis=0)                                  # (T, B, H)
    qw, kw, vw = jnp.split(p['in_proj_w'], 3, axis=0)
    qb, kb, vb = jnp.split(p['in_proj_b'], 3)
    q = (lstm @ qw.T + qb) * (1.0 / (HD ** 0.5))
    k = lstm @ kw.T + kb
    v = lstm @ vw.T + vb

    def to_heads(z):
        return z.reshape(T, B, NH, HD).transpose(1, 2, 0, 3)        # (B, NH, T, HD)

    qh, kh, vh = to_heads(q), to_heads(k), to_heads(v)
    attn = jax.nn.softmax(qh @ kh.transpose(0, 1, 3, 2), axis=-1)
    ctx = attn @ vh                                                 # (B, NH, T, HD)
    ctx = ctx.transpose(2, 0, 1, 3).reshape(T, B, HID)              # (T, B, H)
    y = ctx @ p['out_proj_w'].T + p['out_proj_b']
    last = y[-1]                                                    # (B, H)  == attn_output[:, -1, :]
    return last @ p['fc_w'].T + p['fc_b']


if __name__ == "__main__":
    key = jax.random.PRNGKey(0)
    kx, kp = jax.random.split(key)
    x = jax.random.normal(kx, (B, T, D_IN), jnp.float32)
    params = init_params(kp)

    out = lstm_attention_forward(x, params)
    jax.block_until_ready(out)

    ref = ref_forward(x, params)
    np.testing.assert_allclose(np.asarray(out), np.asarray(ref), atol=1e-3, rtol=1e-3)
    print("KERNEL_OK")
</pallas_src>

<mosaic_0001>
module attributes {stable_mosaic.version = 11 : i64} {
  func.func @lstm_attn_kernel(%arg0: memref<16x4xf32, #tpu.memory_space<vmem>>, %arg1: memref<4x128xf32, #tpu.memory_space<vmem>>, %arg2: memref<32x128xf32, #tpu.memory_space<vmem>>, %arg3: memref<1x128xf32, #tpu.memory_space<vmem>>, %arg4: memref<32x32xf32, #tpu.memory_space<vmem>>, %arg5: memref<1x32xf32, #tpu.memory_space<vmem>>, %arg6: memref<32x32xf32, #tpu.memory_space<vmem>>, %arg7: memref<1x32xf32, #tpu.memory_space<vmem>>, %arg8: memref<32x32xf32, #tpu.memory_space<vmem>>, %arg9: memref<1x32xf32, #tpu.memory_space<vmem>>, %arg10: memref<32x3xf32, #tpu.memory_space<vmem>>, %arg11: memref<1x3xf32, #tpu.memory_space<vmem>>, %arg12: memref<2x3xf32, #tpu.memory_space<vmem>>, %arg13: memref<16x32xf32, #tpu.memory_space<vmem>>) attributes {dimension_semantics = [], scalar_prefetch = 0 : i64, scratch_operands = 1 : i64, tpu.core_type = #tpu.core_type<tc>} {
    %c0 = arith.constant 0 : index
    %c0_0 = arith.constant 0 : index
    %0 = vector.load %arg0[%c0, %c0_0] : memref<16x4xf32, #tpu.memory_space<vmem>>, vector<16x4xf32>
    %c0_1 = arith.constant 0 : index
    %c0_2 = arith.constant 0 : index
    %1 = vector.load %arg1[%c0_1, %c0_2] : memref<4x128xf32, #tpu.memory_space<vmem>>, vector<4x128xf32>
    %cst = arith.constant dense<0.000000e+00> : vector<16x128xf32>
    %2 = tpu.matmul %0, %1, %cst {dimension_numbers = #tpu.dot_dimension_numbers<[1], [0], [0], [1], [0, 0, 1, 1], [], []>} : vector<16x4xf32>, vector<4x128xf32>, vector<16x128xf32> -> vector<16x128xf32>
    %c0_3 = arith.constant 0 : index
    %c0_4 = arith.constant 0 : index
    %3 = vector.load %arg3[%c0_3, %c0_4] : memref<1x128xf32, #tpu.memory_space<vmem>>, vector<1x128xf32>
    %4 = vector.broadcast %3 : vector<1x128xf32> to vector<16x128xf32>
    %5 = arith.addf %2, %4 : vector<16x128xf32>
    %c0_5 = arith.constant 0 : index
    %c0_6 = arith.constant 0 : index
    %6 = vector.load %arg2[%c0_5, %c0_6] : memref<32x128xf32, #tpu.memory_space<vmem>>, vector<32x128xf32>
    %cst_7 = arith.constant 0.000000e+00 : f32
    %7 = vector.broadcast %cst_7 : f32 to vector<2x32xf32>
    %cst_8 = arith.constant 0.000000e+00 : f32
    %8 = vector.broadcast %cst_8 : f32 to vector<2x32xf32>
    %9 = vector.extract_strided_slice %5 {offsets = [0, 0], sizes = [2, 128], strides = [1, 1]} : vector<16x128xf32> to vector<2x128xf32>
    %cst_9 = arith.constant dense<0.000000e+00> : vector<2x128xf32>
    %10 = tpu.matmul %7, %6, %cst_9 {dimension_numbers = #tpu.dot_dimension_numbers<[1], [0], [0], [1], [0, 0, 1, 1], [], []>} : vector<2x32xf32>, vector<32x128xf32>, vector<2x128xf32> -> vector<2x128xf32>
    %11 = arith.addf %9, %10 : vector<2x128xf32>
    %12 = arith.negf %11 : vector<2x128xf32>
    %13 = math.exp %12 : vector<2x128xf32>
    %cst_10 = arith.constant 1.000000e+00 : f32
    %14 = vector.broadcast %cst_10 : f32 to vector<2x128xf32>
    %15 = arith.addf %14, %13 : vector<2x128xf32>
    %16 = arith.divf %14, %15 : vector<2x128xf32>
    %17 = math.tanh %11 : vector<2x128xf32>
    %18 = vector.extract_strided_slice %16 {offsets = [0, 0], sizes = [2, 32], strides = [1, 1]} : vector<2x128xf32> to vector<2x32xf32>
    %19 = vector.extract_strided_slice %16 {offsets = [0, 32], sizes = [2, 32], strides = [1, 1]} : vector<2x128xf32> to vector<2x32xf32>
    %20 = vector.extract_strided_slice %17 {offsets = [0, 64], sizes = [2, 32], strides = [1, 1]} : vector<2x128xf32> to vector<2x32xf32>
    %21 = vector.extract_strided_slice %16 {offsets = [0, 96], sizes = [2, 32], strides = [1, 1]} : vector<2x128xf32> to vector<2x32xf32>
    %22 = arith.mulf %19, %8 : vector<2x32xf32>
    %23 = arith.mulf %18, %20 : vector<2x32xf32>
    %24 = arith.addf %22, %23 : vector<2x32xf32>
    %25 = math.tanh %24 : vector<2x32xf32>
    %26 = arith.mulf %21, %25 : vector<2x32xf32>
    %27 = vector.extract_strided_slice %26 {offsets = [0, 0], sizes = [1, 32], strides = [1, 1]} : vector<2x32xf32> to vector<1x32xf32>
    %c0_11 = arith.constant 0 : index
    %c0_12 = arith.constant 0 : index
    %28 = vector.load %arg13[%c0_11, %c0_12] : memref<16x32xf32, #tpu.memory_space<vmem>>, vector<1x32xf32>
    tpu.vector_store %arg13[%c0_11, %c0_12], %27 {strides = array<i32>} : memref<16x32xf32, #tpu.memory_space<vmem>>, vector<1x32xf32>,
    %29 = vector.extract_strided_slice %26 {offsets = [1, 0], sizes = [1, 32], strides = [1, 1]} : vector<2x32xf32> to vector<1x32xf32>
    %c8 = arith.constant 8 : index
    %c0_13 = arith.constant 0 : index
    %30 = vector.load %arg13[%c8, %c0_13] : memref<16x32xf32, #tpu.memory_space<vmem>>, vector<1x32xf32>
    tpu.vector_store %arg13[%c8, %c0_13], %29 {strides = array<i32>} : memref<16x32xf32, #tpu.memory_space<vmem>>, vector<1x32xf32>,
    %31 = vector.extract_strided_slice %5 {offsets = [2, 0], sizes = [2, 128], strides = [1, 1]} : vector<16x128xf32> to vector<2x128xf32>
    %cst_14 = arith.constant dense<0.000000e+00> : vector<2x128xf32>
    %32 = tpu.matmul %26, %6, %cst_14 {dimension_numbers = #tpu.dot_dimension_numbers<[1], [0], [0], [1], [0, 0, 1, 1], [], []>} : vector<2x32xf32>, vector<32x128xf32>, vector<2x128xf32> -> vector<2x128xf32>
    %33 = arith.addf %31, %32 : vector<2x128xf32>
    %34 = arith.negf %33 : vector<2x128xf32>
    %35 = math.exp %34 : vector<2x128xf32>
    %cst_15 = arith.constant 1.000000e+00 : f32
    %36 = vector.broadcast %cst_15 : f32 to vector<2x128xf32>
    %37 = arith.addf %36, %35 : vector<2x128xf32>
    %38 = arith.divf %36, %37 : vector<2x128xf32>
    %39 = math.tanh %33 : vector<2x128xf32>
    %40 = vector.extract_strided_slice %38 {offsets = [0, 0], sizes = [2, 32], strides = [1, 1]} : vector<2x128xf32> to vector<2x32xf32>
    %41 = vector.extract_strided_slice %38 {offsets = [0, 32], sizes = [2, 32], strides = [1, 1]} : vector<2x128xf32> to vector<2x32xf32>
    %42 = vector.extract_strided_slice %39 {offsets = [0, 64], sizes = [2, 32], strides = [1, 1]} : vector<2x128xf32> to vector<2x32xf32>
    %43 = vector.extract_strided_slice %38 {offsets = [0, 96], sizes = [2, 32], strides = [1, 1]} : vector<2x128xf32> to vector<2x32xf32>
    %44 = arith.mulf %41, %24 : vector<2x32xf32>
    %45 = arith.mulf %40, %42 : vector<2x32xf32>
    %46 = arith.addf %44, %45 : vector<2x32xf32>
    %47 = math.tanh %46 : vector<2x32xf32>
    %48 = arith.mulf %43, %47 : vector<2x32xf32>
    %49 = vector.extract_strided_slice %48 {offsets = [0, 0], sizes = [1, 32], strides = [1, 1]} : vector<2x32xf32> to vector<1x32xf32>
    %c1 = arith.constant 1 : index
    %c0_16 = arith.constant 0 : index
    %50 = vector.load %arg13[%c1, %c0_16] : memref<16x32xf32, #tpu.memory_space<vmem>>, vector<1x32xf32>
    tpu.vector_store %arg13[%c1, %c0_16], %49 {strides = array<i32>} : memref<16x32xf32, #tpu.memory_space<vmem>>, vector<1x32xf32>,
    %51 = vector.extract_strided_slice %48 {offsets = [1, 0], sizes = [1, 32], strides = [1, 1]} : vector<2x32xf32> to vector<1x32xf32>
    %c9 = arith.constant 9 : index
    %c0_17 = arith.constant 0 : index
    %52 = vector.load %arg13[%c9, %c0_17] : memref<16x32xf32, #tpu.memory_space<vmem>>, vector<1x32xf32>
    tpu.vector_store %arg13[%c9, %c0_17], %51 {strides = array<i32>} : memref<16x32xf32, #tpu.memory_space<vmem>>, vector<1x32xf32>,
    %53 = vector.extract_strided_slice %5 {offsets = [4, 0], sizes = [2, 128], strides = [1, 1]} : vector<16x128xf32> to vector<2x128xf32>
    %cst_18 = arith.constant dense<0.000000e+00> : vector<2x128xf32>
    %54 = tpu.matmul %48, %6, %cst_18 {dimension_numbers = #tpu.dot_dimension_numbers<[1], [0], [0], [1], [0, 0, 1, 1], [], []>} : vector<2x32xf32>, vector<32x128xf32>, vector<2x128xf32> -> vector<2x128xf32>
    %55 = arith.addf %53, %54 : vector<2x128xf32>
    %56 = arith.negf %55 : vector<2x128xf32>
    %57 = math.exp %56 : vector<2x128xf32>
    %cst_19 = arith.constant 1.000000e+00 : f32
    %58 = vector.broadcast %cst_19 : f32 to vector<2x128xf32>
    %59 = arith.addf %58, %57 : vector<2x128xf32>
    %60 = arith.divf %58, %59 : vector<2x128xf32>
    %61 = math.tanh %55 : vector<2x128xf32>
    %62 = vector.extract_strided_slice %60 {offsets = [0, 0], sizes = [2, 32], strides = [1, 1]} : vector<2x128xf32> to vector<2x32xf32>
    %63 = vector.extract_strided_slice %60 {offsets = [0, 32], sizes = [2, 32], strides = [1, 1]} : vector<2x128xf32> to vector<2x32xf32>
    %64 = vector.extract_strided_slice %61 {offsets = [0, 64], sizes = [2, 32], strides = [1, 1]} : vector<2x128xf32> to vector<2x32xf32>
    %65 = vector.extract_strided_slice %60 {offsets = [0, 96], sizes = [2, 32], strides = [1, 1]} : vector<2x128xf32> to vector<2x32xf32>
    %66 = arith.mulf %63, %46 : vector<2x32xf32>
    %67 = arith.mulf %62, %64 : vector<2x32xf32>
    %68 = arith.addf %66, %67 : vector<2x32xf32>
    %69 = math.tanh %68 : vector<2x32xf32>
    %70 = arith.mulf %65, %69 : vector<2x32xf32>
    %71 = vector.extract_strided_slice %70 {offsets = [0, 0], sizes = [1, 32], strides = [1, 1]} : vector<2x32xf32> to vector<1x32xf32>
    %c2 = arith.constant 2 : index
    %c0_20 = arith.constant 0 : index
    %72 = vector.load %arg13[%c2, %c0_20] : memref<16x32xf32, #tpu.memory_space<vmem>>, vector<1x32xf32>
    tpu.vector_store %arg13[%c2, %c0_20], %71 {strides = array<i32>} : memref<16x32xf32, #tpu.memory_space<vmem>>, vector<1x32xf32>,
    %73 = vector.extract_strided_slice %70 {offsets = [1, 0], sizes = [1, 32], strides = [1, 1]} : vector<2x32xf32> to vector<1x32xf32>
    %c10 = arith.constant 10 : index
    %c0_21 = arith.constant 0 : index
    %74 = vector.load %arg13[%c10, %c0_21] : memref<16x32xf32, #tpu.memory_space<vmem>>, vector<1x32xf32>
    tpu.vector_store %arg13[%c10, %c0_21], %73 {strides = array<i32>} : memref<16x32xf32, #tpu.memory_space<vmem>>, vector<1x32xf32>,
    %75 = vector.extract_strided_slice %5 {offsets = [6, 0], sizes = [2, 128], strides = [1, 1]} : vector<16x128xf32> to vector<2x128xf32>
    %cst_22 = arith.constant dense<0.000000e+00> : vector<2x128xf32>
    %76 = tpu.matmul %70, %6, %cst_22 {dimension_numbers = #tpu.dot_dimension_numbers<[1], [0], [0], [1], [0, 0, 1, 1], [], []>} : vector<2x32xf32>, vector<32x128xf32>, vector<2x128xf32> -> vector<2x128xf32>
    %77 = arith.addf %75, %76 : vector<2x128xf32>
    %78 = arith.negf %77 : vector<2x128xf32>
    %79 = math.exp %78 : vector<2x128xf32>
    %cst_23 = arith.constant 1.000000e+00 : f32
    %80 = vector.broadcast %cst_23 : f32 to vector<2x128xf32>
    %81 = arith.addf %80, %79 : vector<2x128xf32>
    %82 = arith.divf %80, %81 : vector<2x128xf32>
    %83 = math.tanh %77 : vector<2x128xf32>
    %84 = vector.extract_strided_slice %82 {offsets = [0, 0], sizes = [2, 32], strides = [1, 1]} : vector<2x128xf32> to vector<2x32xf32>
    %85 = vector.extract_strided_slice %82 {offsets = [0, 32], sizes = [2, 32], strides = [1, 1]} : vector<2x128xf32> to vector<2x32xf32>
    %86 = vector.extract_strided_slice %83 {offsets = [0, 64], sizes = [2, 32], strides = [1, 1]} : vector<2x128xf32> to vector<2x32xf32>
    %87 = vector.extract_strided_slice %82 {offsets = [0, 96], sizes = [2, 32], strides = [1, 1]} : vector<2x128xf32> to vector<2x32xf32>
    %88 = arith.mulf %85, %68 : vector<2x32xf32>
    %89 = arith.mulf %84, %86 : vector<2x32xf32>
    %90 = arith.addf %88, %89 : vector<2x32xf32>
    %91 = math.tanh %90 : vector<2x32xf32>
    %92 = arith.mulf %87, %91 : vector<2x32xf32>
    %93 = vector.extract_strided_slice %92 {offsets = [0, 0], sizes = [1, 32], strides = [1, 1]} : vector<2x32xf32> to vector<1x32xf32>
    %c3 = arith.constant 3 : index
    %c0_24 = arith.constant 0 : index
    %94 = vector.load %arg13[%c3, %c0_24] : memref<16x32xf32, #tpu.memory_space<vmem>>, vector<1x32xf32>
    tpu.vector_store %arg13[%c3, %c0_24], %93 {strides = array<i32>} : memref<16x32xf32, #tpu.memory_space<vmem>>, vector<1x32xf32>,
    %95 = vector.extract_strided_slice %92 {offsets = [1, 0], sizes = [1, 32], strides = [1, 1]} : vector<2x32xf32> to vector<1x32xf32>
    %c11 = arith.constant 11 : index
    %c0_25 = arith.constant 0 : index
    %96 = vector.load %arg13[%c11, %c0_25] : memref<16x32xf32, #tpu.memory_space<vmem>>, vector<1x32xf32>
    tpu.vector_store %arg13[%c11, %c0_25], %95 {strides = array<i32>} : memref<16x32xf32, #tpu.memory_space<vmem>>, vector<1x32xf32>,
    %97 = vector.extract_strided_slice %5 {offsets = [8, 0], sizes = [2, 128], strides = [1, 1]} : vector<16x128xf32> to vector<2x128xf32>
    %cst_26 = arith.constant dense<0.000000e+00> : vector<2x128xf32>
    %98 = tpu.matmul %92, %6, %cst_26 {dimension_numbers = #tpu.dot_dimension_numbers<[1], [0], [0], [1], [0, 0, 1, 1], [], []>} : vector<2x32xf32>, vector<32x128xf32>, vector<2x128xf32> -> vector<2x128xf32>
    %99 = arith.addf %97, %98 : vector<2x128xf32>
    %100 = arith.negf %99 : vector<2x128xf32>
    %101 = math.exp %100 : vector<2x128xf32>
    %cst_27 = arith.constant 1.000000e+00 : f32
    %102 = vector.broadcast %cst_27 : f32 to vector<2x128xf32>
    %103 = arith.addf %102, %101 : vector<2x128xf32>
    %104 = arith.divf %102, %103 : vector<2x128xf32>
    %105 = math.tanh %99 : vector<2x128xf32>
    %106 = vector.extract_strided_slice %104 {offsets = [0, 0], sizes = [2, 32], strides = [1, 1]} : vector<2x128xf32> to vector<2x32xf32>
    %107 = vector.extract_strided_slice %104 {offsets = [0, 32], sizes = [2, 32], strides = [1, 1]} : vector<2x128xf32> to vector<2x32xf32>
    %108 = vector.extract_strided_slice %105 {offsets = [0, 64], sizes = [2, 32], strides = [1, 1]} : vector<2x128xf32> to vector<2x32xf32>
    %109 = vector.extract_strided_slice %104 {offsets = [0, 96], sizes = [2, 32], strides = [1, 1]} : vector<2x128xf32> to vector<2x32xf32>
    %110 = arith.mulf %107, %90 : vector<2x32xf32>
    %111 = arith.mulf %106, %108 : vector<2x32xf32>
    %112 = arith.addf %110, %111 : vector<2x32xf32>
    %113 = math.tanh %112 : vector<2x32xf32>
    %114 = arith.mulf %109, %113 : vector<2x32xf32>
    %115 = vector.extract_strided_slice %114 {offsets = [0, 0], sizes = [1, 32], strides = [1, 1]} : vector<2x32xf32> to vector<1x32xf32>
    %c4 = arith.constant 4 : index
    %c0_28 = arith.constant 0 : index
    %116 = vector.load %arg13[%c4, %c0_28] : memref<16x32xf32, #tpu.memory_space<vmem>>, vector<1x32xf32>
    tpu.vector_store %arg13[%c4, %c0_28], %115 {strides = array<i32>} : memref<16x32xf32, #tpu.memory_space<vmem>>, vector<1x32xf32>,
    %117 = vector.extract_strided_slice %114 {offsets = [1, 0], sizes = [1, 32], strides = [1, 1]} : vector<2x32xf32> to vector<1x32xf32>
    %c12 = arith.constant 12 : index
    %c0_29 = arith.constant 0 : index
    %118 = vector.load %arg13[%c12, %c0_29] : memref<16x32xf32, #tpu.memory_space<vmem>>, vector<1x32xf32>
    tpu.vector_store %arg13[%c12, %c0_29], %117 {strides = array<i32>} : memref<16x32xf32, #tpu.memory_space<vmem>>, vector<1x32xf32>,
    %119 = vector.extract_strided_slice %5 {offsets = [10, 0], sizes = [2, 128], strides = [1, 1]} : vector<16x128xf32> to vector<2x128xf32>
    %cst_30 = arith.constant dense<0.000000e+00> : vector<2x128xf32>
    %120 = tpu.matmul %114, %6, %cst_30 {dimension_numbers = #tpu.dot_dimension_numbers<[1], [0], [0], [1], [0, 0, 1, 1], [], []>} : vector<2x32xf32>, vector<32x128xf32>, vector<2x128xf32> -> vector<2x128xf32>
    %121 = arith.addf %119, %120 : vector<2x128xf32>
    %122 = arith.negf %121 : vector<2x128xf32>
    %123 = math.exp %122 : vector<2x128xf32>
    %cst_31 = arith.constant 1.000000e+00 : f32
    %124 = vector.broadcast %cst_31 : f32 to vector<2x128xf32>
    %125 = arith.addf %124, %123 : vector<2x128xf32>
    %126 = arith.divf %124, %125 : vector<2x128xf32>
    %127 = math.tanh %121 : vector<2x128xf32>
    %128 = vector.extract_strided_slice %126 {offsets = [0, 0], sizes = [2, 32], strides = [1, 1]} : vector<2x128xf32> to vector<2x32xf32>
    %129 = vector.extract_strided_slice %126 {offsets = [0, 32], sizes = [2, 32], strides = [1, 1]} : vector<2x128xf32> to vector<2x32xf32>
    %130 = vector.extract_strided_slice %127 {offsets = [0, 64], sizes = [2, 32], strides = [1, 1]} : vector<2x128xf32> to vector<2x32xf32>
    %131 = vector.extract_strided_slice %126 {offsets = [0, 96], sizes = [2, 32], strides = [1, 1]} : vector<2x128xf32> to vector<2x32xf32>
    %132 = arith.mulf %129, %112 : vector<2x32xf32>
    %133 = arith.mulf %128, %130 : vector<2x32xf32>
    %134 = arith.addf %132, %133 : vector<2x32xf32>
    %135 = math.tanh %134 : vector<2x32xf32>
    %136 = arith.mulf %131, %135 : vector<2x32xf32>
    %137 = vector.extract_strided_slice %136 {offsets = [0, 0], sizes = [1, 32], strides = [1, 1]} : vector<2x32xf32> to vector<1x32xf32>
    %c5 = arith.constant 5 : index
    %c0_32 = arith.constant 0 : index
    %138 = vector.load %arg13[%c5, %c0_32] : memref<16x32xf32, #tpu.memory_space<vmem>>, vector<1x32xf32>
    tpu.vector_store %arg13[%c5, %c0_32], %137 {strides = array<i32>} : memref<16x32xf32, #tpu.memory_space<vmem>>, vector<1x32xf32>,
    %139 = vector.extract_strided_slice %136 {offsets = [1, 0], sizes = [1, 32], strides = [1, 1]} : vector<2x32xf32> to vector<1x32xf32>
    %c13 = arith.constant 13 : index
    %c0_33 = arith.constant 0 : index
    %140 = vector.load %arg13[%c13, %c0_33] : memref<16x32xf32, #tpu.memory_space<vmem>>, vector<1x32xf32>
    tpu.vector_store %arg13[%c13, %c0_33], %139 {strides = array<i32>} : memref<16x32xf32, #tpu.memory_space<vmem>>, vector<1x32xf32>,
    %141 = vector.extract_strided_slice %5 {offsets = [12, 0], sizes = [2, 128], strides = [1, 1]} : vector<16x128xf32> to vector<2x128xf32>
    %cst_34 = arith.constant dense<0.000000e+00> : vector<2x128xf32>
    %142 = tpu.matmul %136, %6, %cst_34 {dimension_numbers = #tpu.dot_dimension_numbers<[1], [0], [0], [1], [0, 0, 1, 1], [], []>} : vector<2x32xf32>, vector<32x128xf32>, vector<2x128xf32> -> vector<2x128xf32>
    %143 = arith.addf %141, %142 : vector<2x128xf32>
    %144 = arith.negf %143 : vector<2x128xf32>
    %145 = math.exp %144 : vector<2x128xf32>
    %cst_35 = arith.constant 1.000000e+00 : f32
    %146 = vector.broadcast %cst_35 : f32 to vector<2x128xf32>
    %147 = arith.addf %146, %145 : vector<2x128xf32>
    %148 = arith.divf %146, %147 : vector<2x128xf32>
    %149 = math.tanh %143 : vector<2x128xf32>
    %150 = vector.extract_strided_slice %148 {offsets = [0, 0], sizes = [2, 32], strides = [1, 1]} : vector<2x128xf32> to vector<2x32xf32>
    %151 = vector.extract_strided_slice %148 {offsets = [0, 32], sizes = [2, 32], strides = [1, 1]} : vector<2x128xf32> to vector<2x32xf32>
    %152 = vector.extract_strided_slice %149 {offsets = [0, 64], sizes = [2, 32], strides = [1, 1]} : vector<2x128xf32> to vector<2x32xf32>
    %153 = vector.extract_strided_slice %148 {offsets = [0, 96], sizes = [2, 32], strides = [1, 1]} : vector<2x128xf32> to vector<2x32xf32>
    %154 = arith.mulf %151, %134 : vector<2x32xf32>
    %155 = arith.mulf %150, %152 : vector<2x32xf32>
    %156 = arith.addf %154, %155 : vector<2x32xf32>
    %157 = math.tanh %156 : vector<2x32xf32>
    %158 = arith.mulf %153, %157 : vector<2x32xf32>
    %159 = vector.extract_strided_slice %158 {offsets = [0, 0], sizes = [1, 32], strides = [1, 1]} : vector<2x32xf32> to vector<1x32xf32>
    %c6 = arith.constant 6 : index
    %c0_36 = arith.constant 0 : index
    %160 = vector.load %arg13[%c6, %c0_36] : memref<16x32xf32, #tpu.memory_space<vmem>>, vector<1x32xf32>
    tpu.vector_store %arg13[%c6, %c0_36], %159 {strides = array<i32>} : memref<16x32xf32, #tpu.memory_space<vmem>>, vector<1x32xf32>,
    %161 = vector.extract_strided_slice %158 {offsets = [1, 0], sizes = [1, 32], strides = [1, 1]} : vector<2x32xf32> to vector<1x32xf32>
    %c14 = arith.constant 14 : index
    %c0_37 = arith.constant 0 : index
    %162 = vector.load %arg13[%c14, %c0_37] : memref<16x32xf32, #tpu.memory_space<vmem>>, vector<1x32xf32>
    tpu.vector_store %arg13[%c14, %c0_37], %161 {strides = array<i32>} : memref<16x32xf32, #tpu.memory_space<vmem>>, vector<1x32xf32>,
    %163 = vector.extract_strided_slice %5 {offsets = [14, 0], sizes = [2, 128], strides = [1, 1]} : vector<16x128xf32> to vector<2x128xf32>
    %cst_38 = arith.constant dense<0.000000e+00> : vector<2x128xf32>
    %164 = tpu.matmul %158, %6, %cst_38 {dimension_numbers = #tpu.dot_dimension_numbers<[1], [0], [0], [1], [0, 0, 1, 1], [], []>} : vector<2x32xf32>, vector<32x128xf32>, vector<2x128xf32> -> vector<2x128xf32>
    %165 = arith.addf %163, %164 : vector<2x128xf32>
    %166 = arith.negf %165 : vector<2x128xf32>
    %167 = math.exp %166 : vector<2x128xf32>
    %cst_39 = arith.constant 1.000000e+00 : f32
    %168 = vector.broadcast %cst_39 : f32 to vector<2x128xf32>
    %169 = arith.addf %168, %167 : vector<2x128xf32>
    %170 = arith.divf %168, %169 : vector<2x128xf32>
    %171 = math.tanh %165 : vector<2x128xf32>
    %172 = vector.extract_strided_slice %170 {offsets = [0, 0], sizes = [2, 32], strides = [1, 1]} : vector<2x128xf32> to vector<2x32xf32>
    %173 = vector.extract_strided_slice %170 {offsets = [0, 32], sizes = [2, 32], strides = [1, 1]} : vector<2x128xf32> to vector<2x32xf32>
    %174 = vector.extract_strided_slice %171 {offsets = [0, 64], sizes = [2, 32], strides = [1, 1]} : vector<2x128xf32> to vector<2x32xf32>
    %175 = vector.extract_strided_slice %170 {offsets = [0, 96], sizes = [2, 32], strides = [1, 1]} : vector<2x128xf32> to vector<2x32xf32>
    %176 = arith.mulf %173, %156 : vector<2x32xf32>
    %177 = arith.mulf %172, %174 : vector<2x32xf32>
    %178 = arith.addf %176, %177 : vector<2x32xf32>
    %179 = math.tanh %178 : vector<2x32xf32>
    %180 = arith.mulf %175, %179 : vector<2x32xf32>
    %181 = vector.extract_strided_slice %180 {offsets = [0, 0], sizes = [1, 32], strides = [1, 1]} : vector<2x32xf32> to vector<1x32xf32>
    %c7 = arith.constant 7 : index
    %c0_40 = arith.constant 0 : index
    %182 = vector.load %arg13[%c7, %c0_40] : memref<16x32xf32, #tpu.memory_space<vmem>>, vector<1x32xf32>
    tpu.vector_store %arg13[%c7, %c0_40], %181 {strides = array<i32>} : memref<16x32xf32, #tpu.memory_space<vmem>>, vector<1x32xf32>,
    %183 = vector.extract_strided_slice %180 {offsets = [1, 0], sizes = [1, 32], strides = [1, 1]} : vector<2x32xf32> to vector<1x32xf32>
    %c15 = arith.constant 15 : index
    %c0_41 = arith.constant 0 : index
    %184 = vector.load %arg13[%c15, %c0_41] : memref<16x32xf32, #tpu.memory_space<vmem>>, vector<1x32xf32>
    tpu.vector_store %arg13[%c15, %c0_41], %183 {strides = array<i32>} : memref<16x32xf32, #tpu.memory_space<vmem>>, vector<1x32xf32>,
    %c0_42 = arith.constant 0 : index
    %c0_43 = arith.constant 0 : index
    %185 = vector.load %arg13[%c0_42, %c0_43] : memref<16x32xf32, #tpu.memory_space<vmem>>, vector<16x32xf32>
    %c0_44 = arith.constant 0 : index
    %c0_45 = arith.constant 0 : index
    %186 = vector.load %arg4[%c0_44, %c0_45] : memref<32x32xf32, #tpu.memory_space<vmem>>, vector<32x32xf32>
    %cst_46 = arith.constant dense<0.000000e+00> : vector<2x32xf32>
    %187 = tpu.matmul %180, %186, %cst_46 {dimension_numbers = #tpu.dot_dimension_numbers<[1], [0], [0], [1], [0, 0, 1, 1], [], []>} : vector<2x32xf32>, vector<32x32xf32>, vector<2x32xf32> -> vector<2x32xf32>
    %c0_47 = arith.constant 0 : index
    %c0_48 = arith.constant 0 : index
    %188 = vector.load %arg5[%c0_47, %c0_48] : memref<1x32xf32, #tpu.memory_space<vmem>>, vector<1x32xf32>
    %189 = vector.broadcast %188 : vector<1x32xf32> to vector<2x32xf32>
    %190 = arith.addf %187, %189 : vector<2x32xf32>
    %c0_49 = arith.constant 0 : index
    %c0_50 = arith.constant 0 : index
    %191 = vector.load %arg6[%c0_49, %c0_50] : memref<32x32xf32, #tpu.memory_space<vmem>>, vector<32x32xf32>
    %cst_51 = arith.constant dense<0.000000e+00> : vector<16x32xf32>
    %192 = tpu.matmul %185, %191, %cst_51 {dimension_numbers = #tpu.dot_dimension_numbers<[1], [0], [0], [1], [0, 0, 1, 1], [], []>} : vector<16x32xf32>, vector<32x32xf32>, vector<16x32xf32> -> vector<16x32xf32>
    %c0_52 = arith.constant 0 : index
    %c0_53 = arith.constant 0 : index
    %193 = vector.load %arg7[%c0_52, %c0_53] : memref<1x32xf32, #tpu.memory_space<vmem>>, vector<1x32xf32>
    %194 = vector.broadcast %193 : vector<1x32xf32> to vector<16x32xf32>
    %195 = arith.addf %192, %194 : vector<16x32xf32>
    %c0_54 = arith.constant 0 : index
    %c0_55 = arith.constant 0 : index
    %196 = vector.load %arg8[%c0_54, %c0_55] : memref<32x32xf32, #tpu.memory_space<vmem>>, vector<32x32xf32>
    %cst_56 = arith.constant dense<0.000000e+00> : vector<16x32xf32>
    %197 = tpu.matmul %185, %196, %cst_56 {dimension_numbers = #tpu.dot_dimension_numbers<[1], [0], [0], [1], [0, 0, 1, 1], [], []>} : vector<16x32xf32>, vector<32x32xf32>, vector<16x32xf32> -> vector<16x32xf32>
    %c0_57 = arith.constant 0 : index
    %c0_58 = arith.constant 0 : index
    %198 = vector.load %arg9[%c0_57, %c0_58] : memref<1x32xf32, #tpu.memory_space<vmem>>, vector<1x32xf32>
    %199 = vector.broadcast %198 : vector<1x32xf32> to vector<16x32xf32>
    %200 = arith.addf %197, %199 : vector<16x32xf32>
    %201 = vector.extract_strided_slice %195 {offsets = [0, 0], sizes = [8, 32], strides = [1, 1]} : vector<16x32xf32> to vector<8x32xf32>
    %202 = vector.extract_strided_slice %200 {offsets = [0, 0], sizes = [8, 32], strides = [1, 1]} : vector<16x32xf32> to vector<8x32xf32>
    %203 = vector.extract_strided_slice %190 {offsets = [0, 0], sizes = [1, 32], strides = [1, 1]} : vector<2x32xf32> to vector<1x32xf32>
    %204 = vector.broadcast %203 : vector<1x32xf32> to vector<8x32xf32>
    %205 = arith.mulf %204, %201 : vector<8x32xf32>
    %206 = vector.extract_strided_slice %205 {offsets = [0, 0], sizes = [8, 16], strides = [1, 1]} : vector<8x32xf32> to vector<8x16xf32>
    %cst_59 = arith.constant dense<0.000000e+00> : vector<8xf32>
    %207 = vector.multi_reduction <add>, %206, %cst_59 [1] : vector<8x16xf32> to vector<8xf32>
    %208 = vector.shape_cast %207 : vector<8xf32> to vector<8x1xf32>
    %209 = vector.extract_strided_slice %205 {offsets = [0, 16], sizes = [8, 16], strides = [1, 1]} : vector<8x32xf32> to vector<8x16xf32>
    %cst_60 = arith.constant dense<0.000000e+00> : vector<8xf32>
    %210 = vector.multi_reduction <add>, %209, %cst_60 [1] : vector<8x16xf32> to vector<8xf32>
    %211 = vector.shape_cast %210 : vector<8xf32> to vector<8x1xf32>
    %212 = tpu.concatenate %208, %211 in 1 : vector<8x1xf32>, vector<8x1xf32> -> vector<8x2xf32>
    %cst_61 = arith.constant dense<0xFF800000> : vector<2xf32>
    %213 = vector.multi_reduction <maximumf>, %212, %cst_61 [0] : vector<8x2xf32> to vector<2xf32>
    %214 = vector.shape_cast %213 : vector<2xf32> to vector<1x2xf32>
    %215 = vector.broadcast %214 : vector<1x2xf32> to vector<8x2xf32>
    %216 = arith.subf %212, %215 : vector<8x2xf32>
    %217 = math.exp %216 : vector<8x2xf32>
    %cst_62 = arith.constant dense<0.000000e+00> : vector<2xf32>
    %218 = vector.multi_reduction <add>, %217, %cst_62 [0] : vector<8x2xf32> to vector<2xf32>
    %219 = vector.shape_cast %218 : vector<2xf32> to vector<1x2xf32>
    %220 = vector.broadcast %219 : vector<1x2xf32> to vector<8x2xf32>
    %221 = arith.divf %217, %220 : vector<8x2xf32>
    %222 = vector.extract_strided_slice %221 {offsets = [0, 0], sizes = [8, 1], strides = [1, 1]} : vector<8x2xf32> to vector<8x1xf32>
    %223 = vector.extract_strided_slice %202 {offsets = [0, 0], sizes = [8, 16], strides = [1, 1]} : vector<8x32xf32> to vector<8x16xf32>
    %224 = vector.broadcast %222 : vector<8x1xf32> to vector<8x16xf32>
    %225 = arith.mulf %224, %223 : vector<8x16xf32>
    %cst_63 = arith.constant dense<0.000000e+00> : vector<16xf32>
    %226 = vector.multi_reduction <add>, %225, %cst_63 [0] : vector<8x16xf32> to vector<16xf32>
    %227 = vector.shape_cast %226 : vector<16xf32> to vector<1x16xf32>
    %228 = vector.extract_strided_slice %221 {offsets = [0, 1], sizes = [8, 1], strides = [1, 1]} : vector<8x2xf32> to vector<8x1xf32>
    %229 = vector.extract_strided_slice %202 {offsets = [0, 16], sizes = [8, 16], strides = [1, 1]} : vector<8x32xf32> to vector<8x16xf32>
    %230 = vector.broadcast %228 : vector<8x1xf32> to vector<8x16xf32>
    %231 = arith.mulf %230, %229 : vector<8x16xf32>
    %cst_64 = arith.constant dense<0.000000e+00> : vector<16xf32>
    %232 = vector.multi_reduction <add>, %231, %cst_64 [0] : vector<8x16xf32> to vector<16xf32>
    %233 = vector.shape_cast %232 : vector<16xf32> to vector<1x16xf32>
    %234 = tpu.concatenate %227, %233 in 1 : vector<1x16xf32>, vector<1x16xf32> -> vector<1x32xf32>
    %235 = vector.extract_strided_slice %195 {offsets = [8, 0], sizes = [8, 32], strides = [1, 1]} : vector<16x32xf32> to vector<8x32xf32>
    %236 = vector.extract_strided_slice %200 {offsets = [8, 0], sizes = [8, 32], strides = [1, 1]} : vector<16x32xf32> to vector<8x32xf32>
    %237 = vector.extract_strided_slice %190 {offsets = [1, 0], sizes = [1, 32], strides = [1, 1]} : vector<2x32xf32> to vector<1x32xf32>
    %238 = vector.broadcast %237 : vector<1x32xf32> to vector<8x32xf32>
    %239 = arith.mulf %238, %235 : vector<8x32xf32>
    %240 = vector.extract_strided_slice %239 {offsets = [0, 0], sizes = [8, 16], strides = [1, 1]} : vector<8x32xf32> to vector<8x16xf32>
    %cst_65 = arith.constant dense<0.000000e+00> : vector<8xf32>
    %241 = vector.multi_reduction <add>, %240, %cst_65 [1] : vector<8x16xf32> to vector<8xf32>
    %242 = vector.shape_cast %241 : vector<8xf32> to vector<8x1xf32>
    %243 = vector.extract_strided_slice %239 {offsets = [0, 16], sizes = [8, 16], strides = [1, 1]} : vector<8x32xf32> to vector<8x16xf32>
    %cst_66 = arith.constant dense<0.000000e+00> : vector<8xf32>
    %244 = vector.multi_reduction <add>, %243, %cst_66 [1] : vector<8x16xf32> to vector<8xf32>
    %245 = vector.shape_cast %244 : vector<8xf32> to vector<8x1xf32>
    %246 = tpu.concatenate %242, %245 in 1 : vector<8x1xf32>, vector<8x1xf32> -> vector<8x2xf32>
    %cst_67 = arith.constant dense<0xFF800000> : vector<2xf32>
    %247 = vector.multi_reduction <maximumf>, %246, %cst_67 [0] : vector<8x2xf32> to vector<2xf32>
    %248 = vector.shape_cast %247 : vector<2xf32> to vector<1x2xf32>
    %249 = vector.broadcast %248 : vector<1x2xf32> to vector<8x2xf32>
    %250 = arith.subf %246, %249 : vector<8x2xf32>
    %251 = math.exp %250 : vector<8x2xf32>
    %cst_68 = arith.constant dense<0.000000e+00> : vector<2xf32>
    %252 = vector.multi_reduction <add>, %251, %cst_68 [0] : vector<8x2xf32> to vector<2xf32>
    %253 = vector.shape_cast %252 : vector<2xf32> to vector<1x2xf32>
    %254 = vector.broadcast %253 : vector<1x2xf32> to vector<8x2xf32>
    %255 = arith.divf %251, %254 : vector<8x2xf32>
    %256 = vector.extract_strided_slice %255 {offsets = [0, 0], sizes = [8, 1], strides = [1, 1]} : vector<8x2xf32> to vector<8x1xf32>
    %257 = vector.extract_strided_slice %236 {offsets = [0, 0], sizes = [8, 16], strides = [1, 1]} : vector<8x32xf32> to vector<8x16xf32>
    %258 = vector.broadcast %256 : vector<8x1xf32> to vector<8x16xf32>
    %259 = arith.mulf %258, %257 : vector<8x16xf32>
    %cst_69 = arith.constant dense<0.000000e+00> : vector<16xf32>
    %260 = vector.multi_reduction <add>, %259, %cst_69 [0] : vector<8x16xf32> to vector<16xf32>
    %261 = vector.shape_cast %260 : vector<16xf32> to vector<1x16xf32>
    %262 = vector.extract_strided_slice %255 {offsets = [0, 1], sizes = [8, 1], strides = [1, 1]} : vector<8x2xf32> to vector<8x1xf32>
    %263 = vector.extract_strided_slice %236 {offsets = [0, 16], sizes = [8, 16], strides = [1, 1]} : vector<8x32xf32> to vector<8x16xf32>
    %264 = vector.broadcast %262 : vector<8x1xf32> to vector<8x16xf32>
    %265 = arith.mulf %264, %263 : vector<8x16xf32>
    %cst_70 = arith.constant dense<0.000000e+00> : vector<16xf32>
    %266 = vector.multi_reduction <add>, %265, %cst_70 [0] : vector<8x16xf32> to vector<16xf32>
    %267 = vector.shape_cast %266 : vector<16xf32> to vector<1x16xf32>
    %268 = tpu.concatenate %261, %267 in 1 : vector<1x16xf32>, vector<1x16xf32> -> vector<1x32xf32>
    %269 = tpu.concatenate %234, %268 in 0 : vector<1x32xf32>, vector<1x32xf32> -> vector<2x32xf32>
    %c0_71 = arith.constant 0 : index
    %c0_72 = arith.constant 0 : index
    %270 = vector.load %arg10[%c0_71, %c0_72] : memref<32x3xf32, #tpu.memory_space<vmem>>, vector<32x3xf32>
    %cst_73 = arith.constant dense<0.000000e+00> : vector<2x3xf32>
    %271 = tpu.matmul %269, %270, %cst_73 {dimension_numbers = #tpu.dot_dimension_numbers<[1], [0], [0], [1], [0, 0, 1, 1], [], []>} : vector<2x32xf32>, vector<32x3xf32>, vector<2x3xf32> -> vector<2x3xf32>
    %c0_74 = arith.constant 0 : index
    %c0_75 = arith.constant 0 : index
    %272 = vector.load %arg11[%c0_74, %c0_75] : memref<1x3xf32, #tpu.memory_space<vmem>>, vector<1x3xf32>
    %273 = vector.broadcast %272 : vector<1x3xf32> to vector<2x3xf32>
    %274 = arith.addf %271, %273 : vector<2x3xf32>
    %c0_76 = arith.constant 0 : index
    %c0_77 = arith.constant 0 : index
    %275 = vector.load %arg12[%c0_76, %c0_77] : memref<2x3xf32, #tpu.memory_space<vmem>>, vector<2x3xf32>
    tpu.vector_store %arg12[%c0_76, %c0_77], %274 {strides = array<i32>} : memref<2x3xf32, #tpu.memory_space<vmem>>, vector<2x3xf32>,
    return
  }
}

</mosaic_0001>

<bundles_post_ra>
// kernel: tpu_custom_call.1
= control target key start
LH: loop header
LB: loop body
LE: loop exit
PB: predicated region body
PF: predicated region fallthrough
CT: control target
= control target key end

     0   :  { %17 = vsyncpa [#allocation4], 0  ;;  %s1540_s0 = inlined_call_operand.vmem [shape: f32[16,4], index: 0, kind: input, shape index: {}]   ;;  %s1541_s1 = inlined_call_operand.vmem [shape: f32[4,128], index: 1, kind: input, shape index: {}]   ;;  %s1542_s2 = inlined_call_operand.vmem [shape: f32[32,128], index: 2, kind: input, shape index: {}]   ;;  %s1543_s3 = inlined_call_operand.vmem [shape: f32[1,128], index: 3, kind: input, shape index: {}]   ;;  %s1544_s4 = inlined_call_operand.hbm [shape: f32[32,32], index: 4, kind: input, shape index: {}]   ;;  %s1545_s5 = inlined_call_operand.vmem [shape: f32[1,32], index: 5, kind: input, shape index: {}]   ;;  %s1546_s6 = inlined_call_operand.hbm [shape: f32[32,32], index: 6, kind: input, shape index: {}]   ;;  %s1547_s7 = inlined_call_operand.vmem [shape: f32[1,32], index: 7, kind: input, shape index: {}]   ;;  %s1548_s8 = inlined_call_operand.hbm [shape: f32[32,32], index: 8, kind: input, shape index: {}]   ;;  %s1549_s9 = inlined_call_operand.vmem [shape: f32[1,32], index: 9, kind: input, shape index: {}]   ;;  %s1550_s10 = inlined_call_operand.vmem [shape: f32[32,3], index: 10, kind: input, shape index: {}]   ;;  %s1551_s11 = inlined_call_operand.vmem [shape: f32[1,3], index: 11, kind: input, shape index: {}]   ;;  %s1552_s12 = inlined_call_operand.hbm [shape: f32[2,3], index: 12, kind: output, shape index: {}]  }
   0x1   :  { %18 = vsyncpa [#allocation7], 0 }
   0x2   :  { %19 = vsyncpa [#allocation5], 0  ;;  %s47_s23 = sshll.u32 %s1546_s6, 4  ;;  %s1252_s24 = smov [#allocation6]   ;;  %s48_s23 = int_to_ptr.hbm [resolvable:$true] %s47_s23 }
   0x3   :  { %s49_s25 = sshll.u32 %s1252_s24, 4  ;;  %s32_s28 = sshll.u32 %s1544_s4, 4  ;;  %s50_s25 = int_to_ptr.vmem [resolvable:$true] %s49_s25  ;;  %s33_s28 = int_to_ptr.hbm [resolvable:$true] %s32_s28 }
   0x4   :  { %s1253_s29 = smov 128   ;;  %s1254_s30 = smov 8  }
   0x5   :  { %55 = dma.hbm_to_vmem [thread:$0]  %s48_s23, 512, %s50_s25, [#allocation7], %s1253_s29, %s1253_s29, %s1254_s30  }
   0x6   :  { %s1255_s13 = smov [#allocation3]   ;;  %s62_s17 = sshll.u32 %s1548_s8, 4  ;;  %s63_s17 = int_to_ptr.hbm [resolvable:$true] %s62_s17 }
   0x7   :  { %s34_s14 = sshll.u32 %s1255_s13, 4  ;;  %s1256_s6 = smov [#allocation8]   ;;  %s35_s14 = int_to_ptr.vmem [resolvable:$true] %s34_s14 }
   0x8   :  { %40 = dma.hbm_to_vmem [thread:$0]  %s33_s28, 512, %s35_s14, [#allocation4], %s1253_s29, %s1253_s29, %s1254_s30  }
   0x9   :  { %s64_s18 = sshll.u32 %s1256_s6, 4  ;;  %s65_s18 = int_to_ptr.vmem [resolvable:$true] %s64_s18 }
   0xa   :  { %70 = dma.hbm_to_vmem [thread:$0]  %s63_s17, 512, %s65_s18, [#allocation7], %s1253_s29, %s1253_s29, %s1254_s30  }
   0xb   :  { %1246 = dma.done.wait [#allocation4], 512  }
   0xc   :  { %1247 = vsyncadd [#allocation4], 4294966784 }
   0xd   :  { %1248 = dma.done.wait [#allocation7], 1024  }
   0xe   :  { %1249 = vsyncadd [#allocation7], 4294966272  ;;  %vm103_vm0 = vcmask 1043456   ;;  %vm96_vm1 = vcmask 31744   ;;  %v1341_v0 = vld [vmem:[%s1542_s2 + $0x18] sm:$0xff]  ;;  %v1346_v1 = vld [vmem:[%s1542_s2 + $0x10] sm:$0xff] }
   0xf   :  { %v91_v2 = vld [vmem:[%s1541_s1] sm:$0xf]  ;;  %150 = vmatpush.msra.mxu1 %v1341_v0  ;;  %v1358_v4 = vld [vmem:[%s1542_s2 + $0x8] sm:$0xff]  ;;  %295 = vmatpush.msra.mxu3 %v1341_v0  ;;  %v1257_v6 = vmov 0.0   ;;  %s1258_s29 = smov 64   ;;  %vm200_vm6 = vcmask 253952  }
  0x10   :  { %1031 = vmatpush.msk.msra.mxu0 %vm103_vm0, %v91_v2  ;;  %v89_v3 = vld [vmem:[%s1540_s0] sm:$0xff]  ;;  %1055 = vmatpush.msk.msra.mxu2 %vm103_vm0, %v91_v2  ;;  %v90_v32 = vld [vmem:[%s1540_s0 + $0x8] sm:$0xff]  ;;  %vm134_vm7 = vcmask 261120   ;;  %vm202_vm8 = vcmask 254977   ;;  %s1260_s17 = smov 112   ;;  %s1263_s23 = smov [#allocation9]  }
  0x11   :  { %1032 = vmatmul.msk.f32.vlgmr.msra.gmra.mxu0 %vm96_vm1, %v89_v3  ;;  %151 = vmatpush.msra.mxu1 %v1346_v1  ;;  %v1366_v5 = vld [vmem:[%s1542_s2] sm:$0xff]  ;;  %s1018_s24 = sshll.u32 %s1263_s23, 4  ;;  %s1020_s1 = sshll.u32 %s1552_s12, 4  ;;  %s1019_s24 = int_to_ptr.vmem [resolvable:$true] %s1018_s24  ;;  %s1021_s1 = int_to_ptr.hbm [resolvable:$true] %s1020_s1 }
  0x12   :  { %218 = vmatpush.msrb.mxu2 %v1341_v0  ;;  %593 = vmatpush.msrb.mxu0 %v1341_v0  ;;  %v1396_v7 = vld [vmem:[%s1543_s3] ss:$0 sm:$0xff]  ;;  %s1259_s3 = smov 32  }
  0x13   :  { %152 = vmatpush.msra.mxu1 %v1358_v4  ;;  %296 = vmatpush.msra.mxu3 %v1346_v1 }
  0x14   :  { %219 = vmatpush.msrb.mxu2 %v1346_v1  ;;  %594 = vmatpush.msrb.mxu0 %v1346_v1 }
  0x15   :  { %153 = vmatpush.msra.mxu1 %v1366_v5  ;;  %297 = vmatpush.msra.mxu3 %v1358_v4 }
  0x16   :  { %220 = vmatpush.msrb.mxu2 %v1358_v4  ;;  %154 = vmatmul.f32.vlgmr.msra.gmra.mxu1 %v1257_v6 }
  0x17   :  { %372 = vmatpush.msrb.mxu1 %v1341_v0  ;;  %298 = vmatpush.msra.mxu3 %v1366_v5 }
  0x18   :  { %221 = vmatpush.msrb.mxu2 %v1366_v5  ;;  %595 = vmatpush.msrb.mxu0 %v1358_v4 }
  0x19   :  { %373 = vmatpush.msrb.mxu1 %v1346_v1  ;;  %518 = vmatpush.msrb.mxu3 %v1341_v0 }
  0x1a   :  { %596 = vmatpush.msrb.mxu0 %v1366_v5  ;;  %1033 = vmatmul.msk.f32.vlgmr.msra.gmra.mxu2 %vm96_vm1, %v90_v32 }
  0x1b   :  { %374 = vmatpush.msrb.mxu1 %v1358_v4  ;;  %519 = vmatpush.msrb.mxu3 %v1346_v1 }
  0x1c   :  { %449 = vmatpush.msra.mxu2 %v1341_v0 }
  0x1d   :  { %375 = vmatpush.msrb.mxu1 %v1366_v5  ;;  %520 = vmatpush.msrb.mxu3 %v1358_v4 }
  0x1e   :  { %450 = vmatpush.msra.mxu2 %v1346_v1 }
  0x1f   :  { %668 = vmatpush.msra.mxu1 %v1341_v0  ;;  %521 = vmatpush.msrb.mxu3 %v1366_v5 }
  0x20   :  { %451 = vmatpush.msra.mxu2 %v1358_v4 }
  0x21   :  { %669 = vmatpush.msra.mxu1 %v1346_v1 }
  0x22   :  { %452 = vmatpush.msra.mxu2 %v1366_v5 }
  0x23   :  { %670 = vmatpush.msra.mxu1 %v1358_v4 }
  0x25   :  { %671 = vmatpush.msra.mxu1 %v1366_v5 }
  0x8e   :  { %v124_v8 = vpop.f32.mrf.mxu0 }
  0x8f   :  { %v1399_v9 = vadd.f32 %v1396_v7, %v124_v8 }
  0x93   :  { %v155_v10 = vpop.f32.mrf.mxu1 }
  0x94   :  { %v158_v11 = vadd.f32 %v155_v10, %v1399_v9 }
  0x96   :  { %1078 = vtanh.f32 %v158_v11  ;;  %v1034_v13 = vmul.f32 -1.442695, %v158_v11 }
  0x98   :  { %1080 = vpow2.f32 %v1034_v13 }
  0x9c   :  { %v1079_v12 = vpop.eup %1078 }
  0x9d   :  { %181 = vrot.lane.b32.xlu0 %v1079_v12, %s1258_s29  ;;  %v1417_v36 = vpop.f32.mrf.mxu2 }
  0x9e   :  { %v1081_v14 = vpop.eup %1080 }
  0x9f   :  { %v162_v15 = vadd.f32 1.0, %v1081_v14 }
  0xa1   :  { %1082 = vrcp.f32 %v162_v15  ;;  %v174_v21 = vand.u32 2147483648, %v162_v15  ;;  %vm168_vm3 = vweird.f32 %v162_v15  ;;  %v172_v22 = vand.u32 2147483647, %v162_v15 }
  0xa3   :  { %v175_v24 = vor.u32 1.1754944e-38, %v174_v21  ;;  %vm173_vm5 = vcmp.eq.f32.partialorder %v172_v22, 8.507059e+37 }
  0xa7   :  { %v1083_v16 = vpop.eup %1082 }
  0xa8   :  { %v164_v17 = vmul.f32 %v1083_v16, %v162_v15  ;;  %vm169_vm2 = vweird.f32 %v1083_v16 }
  0xa9   :  { %vm170_vm4 = vmor %vm168_vm3, %vm169_vm2 }
  0xaa   :  { %v165_v18 = vsub.f32 1.0, %v164_v17 }
  0xac   :  { %v166_v19 = vmul.f32 %v1083_v16, %v165_v18 }
  0xae   :  { %v167_v20 = vadd.f32 %v1083_v16, %v166_v19 }
  0xb0   :  { %v171_v23 = vsel %vm170_vm4, %v1083_v16, %v167_v20 }
  0xb1   :  { %v176_v26 = vsel %vm173_vm5, %v175_v24, %v171_v23 }
  0xb2   :  { %v179_v28 = vmul.f32 0.0, %v176_v26 }
 0x10f   :  { %v182_v25 = vpop.permute.xlu0 %181 }
 0x110   :  { %v184_v27 = vmul.f32 %v182_v25, %v176_v26 }
 0x112   :  { %186 = vrot.lane.b32.xlu0 %v184_v27, %s1259_s3 }
 0x184   :  { %v187_v29 = vpop.permute.xlu0 %186 }
 0x185   :  { %v189_v30 = vadd.f32 %v187_v29, %v179_v28 }
 0x187   :  { %1084 = vtanh.f32 %v189_v30  ;;  %v251_v56 = vrot.slane %v189_v30, 6 }
 0x18d   :  { %v1085_v31 = vpop.eup %1084 }
 0x18e   :  { %192 = vrot.lane.b32.xlu1 %v1085_v31, %s1258_s29 }
 0x200   :  { %v193_v33 = vpop.permute.xlu1 %192 }
 0x201   :  { %v195_v34 = vmul.f32 %v193_v33, %v176_v26 }
 0x203   :  { %197 = vrot.lane.b32.xlu1 %v195_v34, %s1259_s3 }
 0x275   :  { %v198_v35 = vpop.permute.xlu1 %197 }
 0x276   :  { %201 = vst.msk [vmem:[#allocation2] sm:$0x1] %vm200_vm6, %v198_v35  ;;  %1035 = vmatmul.msk.f32.vlgmr.msrb.gmra.mxu2 %vm134_vm7, %v198_v35 }
 0x277   :  { %203 = vst.msk [vmem:[#allocation2 + $0x7] sm:$0x2] %vm202_vm8, %v198_v35 }
 0x2f9   :  { %v223_v37 = vpop.f32.mrf.mxu2 }
 0x2fa   :  { %v227_v38 = vrot.slane %v223_v37, 6 }
 0x2fc   :  { %v229_v39 = vadd.f32 %v227_v38, %v1399_v9 }
 0x2fe   :  { %1086 = vtanh.f32 %v229_v39  ;;  %v1036_v41 = vmul.f32 -1.442695, %v229_v39 }
 0x300   :  { %1088 = vpow2.f32 %v1036_v41 }
 0x304   :  { %v1087_v40 = vpop.eup %1086 }
 0x305   :  { %255 = vrot.lane.b32.xlu2 %v1087_v40, %s1258_s29 }
 0x306   :  { %v1089_v42 = vpop.eup %1088 }
 0x307   :  { %v233_v43 = vadd.f32 1.0, %v1089_v42 }
 0x309   :  { %1090 = vrcp.f32 %v233_v43  ;;  %v245_v49 = vand.u32 2147483648, %v233_v43  ;;  %vm239_vm10 = vweird.f32 %v233_v43  ;;  %v243_v50 = vand.u32 2147483647, %v233_v43 }
 0x30b   :  { %v246_v52 = vor.u32 1.1754944e-38, %v245_v49  ;;  %vm244_vm12 = vcmp.eq.f32.partialorder %v243_v50, 8.507059e+37 }
 0x30f   :  { %v1091_v44 = vpop.eup %1090 }
 0x310   :  { %v235_v45 = vmul.f32 %v1091_v44, %v233_v43  ;;  %vm240_vm9 = vweird.f32 %v1091_v44 }
 0x311   :  { %vm241_vm11 = vmor %vm239_vm10, %vm240_vm9 }
 0x312   :  { %v236_v46 = vsub.f32 1.0, %v235_v45 }
 0x314   :  { %v237_v47 = vmul.f32 %v1091_v44, %v236_v46 }
 0x316   :  { %v238_v48 = vadd.f32 %v1091_v44, %v237_v47 }
 0x318   :  { %v242_v51 = vsel %vm241_vm11, %v1091_v44, %v238_v48 }
 0x319   :  { %v247_v54 = vsel %vm244_vm12, %v246_v52, %v242_v51 }
 0x31a   :  { %v253_v57 = vmul.f32 %v251_v56, %v247_v54 }
 0x35f   :  { %v256_v53 = vpop.permute.xlu2 %255 }
 0x360   :  { %v258_v55 = vmul.f32 %v256_v53, %v247_v54 }
 0x362   :  { %260 = vrot.lane.b32.xlu2 %v258_v55, %s1259_s3 }
 0x3bc   :  { %v261_v58 = vpop.permute.xlu2 %260 }
 0x3bd   :  { %v263_v59 = vadd.f32 %v261_v58, %v253_v57 }
 0x3bf   :  { %1092 = vtanh.f32 %v263_v59  ;;  %v328_v22 = vrot.slane %v263_v59, 6  ;;  %v1448_v59 = vadd.f32 %v1396_v7, %v1417_v36 }
 0x3c5   :  { %v1093_v60 = vpop.eup %1092 }
 0x3c6   :  { %266 = vrot.lane.b32.xlu0 %v1093_v60, %s1258_s29 }
 0x438   :  { %v267_v61 = vpop.permute.xlu0 %266 }
 0x439   :  { %v1423_v62 = vmul.f32 %v267_v61, %v247_v54 }
 0x43b   :  { %v278_v63 = vrot.slane %v1423_v62, 2 }
 0x43d   :  { %279 = vrot.lane.b32.xlu1 %v278_v63, %s1259_s3 }
 0x4af   :  { %v280_v0 = vpop.permute.xlu1 %279 }
 0x4b0   :  { %1037 = vmatmul.msk.f32.vlgmr.msra.gmra.mxu3 %vm134_vm7, %v280_v0 }
 0x533   :  { %v300_v1 = vpop.f32.mrf.mxu3 }
 0x534   :  { %v304_v2 = vrot.slane %v300_v1, 4 }
 0x536   :  { %v306_v3 = vadd.f32 %v304_v2, %v1399_v9 }
 0x538   :  { %1094 = vtanh.f32 %v306_v3  ;;  %v1038_v5 = vmul.f32 -1.442695, %v306_v3 }
 0x53a   :  { %1096 = vpow2.f32 %v1038_v5 }
 0x53e   :  { %v1095_v4 = vpop.eup %1094 }
 0x53f   :  { %332 = vrot.lane.b32.xlu2 %v1095_v4, %s1258_s29 }
 0x540   :  { %v1097_v6 = vpop.eup %1096 }
 0x541   :  { %v310_v8 = vadd.f32 1.0, %v1097_v6 }
 0x543   :  { %1098 = vrcp.f32 %v310_v8  ;;  %v322_v15 = vand.u32 2147483648, %v310_v8  ;;  %vm316_vm14 = vweird.f32 %v310_v8  ;;  %v320_v16 = vand.u32 2147483647, %v310_v8 }
 0x545   :  { %v323_v18 = vor.u32 1.1754944e-38, %v322_v15  ;;  %vm321_vm0 = vcmp.eq.f32.partialorder %v320_v16, 8.507059e+37 }
 0x549   :  { %v1099_v10 = vpop.eup %1098 }
 0x54a   :  { %v312_v11 = vmul.f32 %v1099_v10, %v310_v8  ;;  %vm317_vm13 = vweird.f32 %v1099_v10 }
 0x54b   :  { %vm318_vm15 = vmor %vm316_vm14, %vm317_vm13 }
 0x54c   :  { %v313_v12 = vsub.f32 1.0, %v312_v11 }
 0x54e   :  { %v314_v13 = vmul.f32 %v1099_v10, %v313_v12 }
 0x550   :  { %v315_v14 = vadd.f32 %v1099_v10, %v314_v13 }
 0x552   :  { %v319_v17 = vsel %vm318_vm15, %v1099_v10, %v315_v14 }
 0x553   :  { %v324_v20 = vsel %vm321_vm0, %v323_v18, %v319_v17 }
 0x554   :  { %v330_v23 = vmul.f32 %v328_v22, %v324_v20 }
 0x599   :  { %v333_v19 = vpop.permute.xlu2 %332 }
 0x59a   :  { %v335_v21 = vmul.f32 %v333_v19, %v324_v20 }
 0x59c   :  { %337 = vrot.lane.b32.xlu0 %v335_v21, %s1259_s3 }
 0x60e   :  { %v338_v24 = vpop.permute.xlu0 %337 }
 0x60f   :  { %v340_v25 = vadd.f32 %v338_v24, %v330_v23 }
 0x611   :  { %1100 = vtanh.f32 %v340_v25  ;;  %v405_v50 = vrot.slane %v340_v25, 6 }
 0x617   :  { %v1101_v26 = vpop.eup %1100 }
 0x618   :  { %343 = vrot.lane.b32.xlu1 %v1101_v26, %s1258_s29 }
 0x68a   :  { %v344_v27 = vpop.permute.xlu1 %343 }
 0x68b   :  { %v1432_v28 = vmul.f32 %v344_v27, %v324_v20 }
 0x68d   :  { %v355_v29 = vrot.slane %v1432_v28, 4 }
 0x68f   :  { %356 = vrot.lane.b32.xlu2 %v355_v29, %s1259_s3 }
 0x6e9   :  { %v357_v30 = vpop.permute.xlu2 %356 }
 0x6ea   :  { %1039 = vmatmul.msk.f32.vlgmr.msrb.gmra.mxu1 %vm134_vm7, %v357_v30 }
 0x767   :  { %v377_v31 = vpop.f32.mrf.mxu1 }
 0x768   :  { %v381_v32 = vrot.slane %v377_v31, 2 }
 0x76a   :  { %v383_v33 = vadd.f32 %v381_v32, %v1399_v9 }
 0x76c   :  { %1102 = vtanh.f32 %v383_v33  ;;  %v1040_v35 = vmul.f32 -1.442695, %v383_v33 }
 0x76e   :  { %1104 = vpow2.f32 %v1040_v35 }
 0x772   :  { %v1103_v34 = vpop.eup %1102 }
 0x773   :  { %409 = vrot.lane.b32.xlu0 %v1103_v34, %s1258_s29 }
 0x774   :  { %v1105_v37 = vpop.eup %1104 }
 0x775   :  { %v387_v38 = vadd.f32 1.0, %v1105_v37 }
 0x777   :  { %1106 = vrcp.f32 %v387_v38  ;;  %v399_v44 = vand.u32 2147483648, %v387_v38  ;;  %vm393_vm2 = vweird.f32 %v387_v38  ;;  %v397_v45 = vand.u32 2147483647, %v387_v38 }
 0x779   :  { %v400_v46 = vor.u32 1.1754944e-38, %v399_v44  ;;  %vm398_vm4 = vcmp.eq.f32.partialorder %v397_v45, 8.507059e+37 }
 0x77d   :  { %v1107_v39 = vpop.eup %1106 }
 0x77e   :  { %v389_v40 = vmul.f32 %v1107_v39, %v387_v38  ;;  %vm394_vm1 = vweird.f32 %v1107_v39 }
 0x77f   :  { %vm395_vm3 = vmor %vm393_vm2, %vm394_vm1 }
 0x780   :  { %v390_v41 = vsub.f32 1.0, %v389_v40 }
 0x782   :  { %v391_v42 = vmul.f32 %v1107_v39, %v390_v41 }
 0x784   :  { %v392_v43 = vadd.f32 %v1107_v39, %v391_v42 }
 0x786   :  { %v396_v9 = vsel %vm395_vm3, %v1107_v39, %v392_v43 }
 0x787   :  { %v401_v48 = vsel %vm398_vm4, %v400_v46, %v396_v9 }
 0x788   :  { %v407_v51 = vmul.f32 %v405_v50, %v401_v48 }
 0x7e5   :  { %v410_v47 = vpop.permute.xlu0 %409 }
 0x7e6   :  { %v412_v49 = vmul.f32 %v410_v47, %v401_v48 }
 0x7e8   :  { %414 = vrot.lane.b32.xlu1 %v412_v49, %s1259_s3 }
 0x85a   :  { %v415_v52 = vpop.permute.xlu1 %414 }
 0x85b   :  { %v417_v53 = vadd.f32 %v415_v52, %v407_v51 }
 0x85d   :  { %1108 = vtanh.f32 %v417_v53  ;;  %v479_v15 = vrot.slane %v417_v53, 6 }
 0x863   :  { %v1109_v54 = vpop.eup %1108 }
 0x864   :  { %420 = vrot.lane.b32.xlu2 %v1109_v54, %s1258_s29 }
 0x8be   :  { %v421_v55 = vpop.permute.xlu2 %420 }
 0x8bf   :  { %v1441_v56 = vmul.f32 %v421_v55, %v401_v48 }
 0x8c1   :  { %v432_v57 = vrot.slane %v1441_v56, 6 }
 0x8c3   :  { %433 = vrot.lane.b32.xlu0 %v432_v57, %s1259_s3 }
 0x935   :  { %v434_v58 = vpop.permute.xlu0 %433 }
 0x936   :  { %1041 = vmatmul.msk.f32.vlgmr.msra.gmra.mxu2 %vm134_vm7, %v434_v58 }
 0x9b9   :  { %v454_v60 = vpop.f32.mrf.mxu2 }
 0x9ba   :  { %v457_v61 = vadd.f32 %v454_v60, %v1448_v59 }
 0x9bc   :  { %1110 = vtanh.f32 %v457_v61  ;;  %v1042_v0 = vmul.f32 -1.442695, %v457_v61 }
 0x9be   :  { %1112 = vpow2.f32 %v1042_v0 }
 0x9c2   :  { %v1111_v63 = vpop.eup %1110 }
 0x9c3   :  { %483 = vrot.lane.b32.xlu1 %v1111_v63, %s1258_s29 }
 0x9c4   :  { %v1113_v1 = vpop.eup %1112 }
 0x9c5   :  { %v461_v2 = vadd.f32 1.0, %v1113_v1 }
 0x9c7   :  { %1114 = vrcp.f32 %v461_v2  ;;  %v473_v7 = vand.u32 2147483648, %v461_v2  ;;  %vm467_vm9 = vweird.f32 %v461_v2  ;;  %v471_v36 = vand.u32 2147483647, %v461_v2 }
 0x9c9   :  { %v474_v11 = vor.u32 1.1754944e-38, %v473_v7  ;;  %vm472_vm11 = vcmp.eq.f32.partialorder %v471_v36, 8.507059e+37 }
 0x9cd   :  { %v1115_v3 = vpop.eup %1114 }
 0x9ce   :  { %v463_v4 = vmul.f32 %v1115_v3, %v461_v2  ;;  %vm468_vm5 = vweird.f32 %v1115_v3 }
 0x9cf   :  { %vm469_vm10 = vmor %vm467_vm9, %vm468_vm5  ;;  %vm274_vm9 = vcmask 256002  }
 0x9d0   :  { %v464_v5 = vsub.f32 1.0, %v463_v4 }
 0x9d2   :  { %v465_v6 = vmul.f32 %v1115_v3, %v464_v5 }
 0x9d4   :  { %v466_v8 = vadd.f32 %v1115_v3, %v465_v6 }
 0x9d6   :  { %v470_v10 = vsel %vm469_vm10, %v1115_v3, %v466_v8  ;;  %vm276_vm10 = vcmask 257027  }
 0x9d7   :  { %v475_v13 = vsel %vm472_vm11, %v474_v11, %v470_v10  ;;  %vm351_vm11 = vcmask 258052  }
 0x9d8   :  { %v481_v16 = vmul.f32 %v479_v15, %v475_v13 }
 0xa35   :  { %v484_v12 = vpop.permute.xlu1 %483 }
 0xa36   :  { %v486_v14 = vmul.f32 %v484_v12, %v475_v13 }
 0xa38   :  { %488 = vrot.lane.b32.xlu2 %v486_v14, %s1259_s3 }
 0xa92   :  { %v489_v17 = vpop.permute.xlu2 %488 }
 0xa93   :  { %v491_v18 = vadd.f32 %v489_v17, %v481_v16 }
 0xa95   :  { %1116 = vtanh.f32 %v491_v18  ;;  %v551_v44 = vrot.slane %v491_v18, 6 }
 0xa9b   :  { %v1117_v19 = vpop.eup %1116 }
 0xa9c   :  { %494 = vrot.lane.b32.xlu0 %v1117_v19, %s1258_s29 }
 0xb0e   :  { %v495_v20 = vpop.permute.xlu0 %494 }
 0xb0f   :  { %v497_v21 = vmul.f32 %v495_v20, %v475_v13 }
 0xb11   :  { %499 = vrot.lane.b32.xlu1 %v497_v21, %s1259_s3 }
 0xb83   :  { %v500_v22 = vpop.permute.xlu1 %499 }
 0xb84   :  { %502 = vst.msk [vmem:[#allocation2 + $0x4] sm:$0x1] %vm200_vm6, %v500_v22  ;;  %1043 = vmatmul.msk.f32.vlgmr.msrb.gmra.mxu3 %vm134_vm7, %v500_v22 }
 0xb85   :  { %503 = vst.msk [vmem:[#allocation2 + $0xb] sm:$0x2] %vm202_vm8, %v500_v22 }
 0xc07   :  { %v523_v23 = vpop.f32.mrf.mxu3 }
 0xc08   :  { %v527_v24 = vrot.slane %v523_v23, 6 }
 0xc0a   :  { %v529_v25 = vadd.f32 %v527_v24, %v1448_v59 }
 0xc0c   :  { %1118 = vtanh.f32 %v529_v25  ;;  %v1044_v27 = vmul.f32 -1.442695, %v529_v25 }
 0xc0e   :  { %1120 = vpow2.f32 %v1044_v27 }
 0xc12   :  { %v1119_v26 = vpop.eup %1118 }
 0xc13   :  { %555 = vrot.lane.b32.xlu2 %v1119_v26, %s1258_s29 }
 0xc14   :  { %v1121_v29 = vpop.eup %1120 }
 0xc15   :  { %v533_v30 = vadd.f32 1.0, %v1121_v29 }
 0xc17   :  { %1122 = vrcp.f32 %v533_v30  ;;  %v545_v37 = vand.u32 2147483648, %v533_v30  ;;  %vm539_vm8 = vweird.f32 %v533_v30  ;;  %v543_v38 = vand.u32 2147483647, %v533_v30 }
 0xc19   :  { %v546_v40 = vor.u32 1.1754944e-38, %v545_v37  ;;  %vm544_vm13 = vcmp.eq.f32.partialorder %v543_v38, 8.507059e+37 }
 0xc1d   :  { %v1123_v31 = vpop.eup %1122 }
 0xc1e   :  { %v535_v32 = vmul.f32 %v1123_v31, %v533_v30  ;;  %vm540_vm6 = vweird.f32 %v1123_v31 }
 0xc1f   :  { %vm541_vm12 = vmor %vm539_vm8, %vm540_vm6  ;;  %vm353_vm6 = vcmask 259077   ;;  %vm428_vm8 = vcmask 260102  }
 0xc20   :  { %v536_v33 = vsub.f32 1.0, %v535_v32 }
 0xc22   :  { %v537_v34 = vmul.f32 %v1123_v31, %v536_v33 }
 0xc24   :  { %v538_v35 = vadd.f32 %v1123_v31, %v537_v34 }
 0xc26   :  { %v542_v39 = vsel %vm541_vm12, %v1123_v31, %v538_v35  ;;  %vm430_vm12 = vcmask 261127  }
 0xc27   :  { %v547_v42 = vsel %vm544_vm13, %v546_v40, %v542_v39  ;;  %vm831_vm13 = vcmask 130048  }
 0xc28   :  { %v553_v45 = vmul.f32 %v551_v44, %v547_v42 }
 0xc6d   :  { %v556_v41 = vpop.permute.xlu2 %555 }
 0xc6e   :  { %v558_v43 = vmul.f32 %v556_v41, %v547_v42 }
 0xc70   :  { %560 = vrot.lane.b32.xlu0 %v558_v43, %s1259_s3 }
 0xce2   :  { %v561_v9 = vpop.permute.xlu0 %560 }
 0xce3   :  { %v563_v46 = vadd.f32 %v561_v9, %v553_v45 }
 0xce5   :  { %1124 = vtanh.f32 %v563_v46  ;;  %v626_v10 = vrot.slane %v563_v46, 6  ;;  %v730_v46 = vld [vmem:[#allocation3 + $0x10] sm:$0xff] }
 0xceb   :  { %v1125_v47 = vpop.eup %1124 }
 0xcec   :  { %566 = vrot.lane.b32.xlu1 %v1125_v47, %s1258_s29  ;;  %v729_v47 = vld [vmem:[#allocation3 + $0x8] sm:$0xff] }
 0xd5e   :  { %v567_v48 = vpop.permute.xlu1 %566 }
 0xd5f   :  { %v569_v49 = vmul.f32 %v567_v48, %v547_v42 }
 0xd61   :  { %v576_v50 = vrot.slane %v569_v49, 2 }
 0xd63   :  { %577 = vrot.lane.b32.xlu2 %v576_v50, %s1259_s3 }
 0xdbd   :  { %v578_v51 = vpop.permute.xlu2 %577 }
 0xdbe   :  { %1045 = vmatmul.msk.f32.vlgmr.msrb.gmra.mxu0 %vm134_vm7, %v578_v51 }
 0xe3b   :  { %v598_v52 = vpop.f32.mrf.mxu0 }
 0xe3c   :  { %v602_v53 = vrot.slane %v598_v52, 4  ;;  %v728_v52 = vld [vmem:[#allocation3] sm:$0xff] }
 0xe3e   :  { %v604_v54 = vadd.f32 %v602_v53, %v1448_v59  ;;  %v801_v53 = vld [vmem:[#allocation8 + $0x18] sm:$0xff] }
 0xe3f   :  { %818 = vmatpush.msra.mxu0 %v801_v53 }
 0xe40   :  { %1126 = vtanh.f32 %v604_v54  ;;  %v1046_v57 = vmul.f32 -1.442695, %v604_v54  ;;  %v763_v54 = vld [vmem:[#allocation6 + $0x10] sm:$0xff] }
 0xe42   :  { %1128 = vpow2.f32 %v1046_v57  ;;  %v762_v57 = vld [vmem:[#allocation6 + $0x8] sm:$0xff] }
 0xe46   :  { %v1127_v55 = vpop.eup %1126 }
 0xe47   :  { %630 = vrot.lane.b32.xlu0 %v1127_v55, %s1258_s29  ;;  %v800_v55 = vld [vmem:[#allocation8 + $0x10] sm:$0xff] }
 0xe48   :  { %v1129_v58 = vpop.eup %1128  ;;  %819 = vmatpush.msra.mxu0 %v800_v55 }
 0xe49   :  { %v608_v60 = vadd.f32 1.0, %v1129_v58  ;;  %v799_v58 = vld [vmem:[#allocation8 + $0x8] sm:$0xff] }
 0xe4a   :  { %820 = vmatpush.msra.mxu0 %v799_v58 }
 0xe4b   :  { %1130 = vrcp.f32 %v608_v60  ;;  %v620_v3 = vand.u32 2147483648, %v608_v60  ;;  %vm614_vm15 = vweird.f32 %v608_v60  ;;  %v618_v4 = vand.u32 2147483647, %v608_v60 }
 0xe4d   :  { %v621_v6 = vor.u32 1.1754944e-38, %v620_v3  ;;  %vm619_vm1 = vcmp.eq.f32.partialorder %v618_v4, 8.507059e+37  ;;  %v1074_v3 = vld [vmem:[%s1545_s5] ss:$0 sm:$0xff] }
 0xe51   :  { %v1131_v61 = vpop.eup %1130 }
 0xe52   :  { %v610_v63 = vmul.f32 %v1131_v61, %v608_v60  ;;  %vm615_vm14 = vweird.f32 %v1131_v61  ;;  %v761_v60 = vld [vmem:[#allocation6] sm:$0xff] }
 0xe53   :  { %vm616_vm0 = vmor %vm614_vm15, %vm615_vm14  ;;  %vm842_vm14 = vcmask 7168   ;;  %vm844_vm15 = vcmask 15360  }
 0xe54   :  { %v611_v0 = vsub.f32 1.0, %v610_v63 }
 0xe56   :  { %v612_v1 = vmul.f32 %v1131_v61, %v611_v0 }
 0xe58   :  { %v613_v2 = vadd.f32 %v1131_v61, %v612_v1 }
 0xe5a   :  { %v617_v5 = vsel %vm616_vm0, %v1131_v61, %v613_v2  ;;  %v798_v61 = vld [vmem:[#allocation8] sm:$0xff] }
 0xe5b   :  { %v622_v7 = vsel %vm619_vm1, %v621_v6, %v617_v5  ;;  %821 = vmatpush.msra.mxu0 %v798_v61  ;;  %v1076_v6 = vld [vmem:[%s1547_s7] ss:$0 sm:$0xff] }
 0xe5c   :  { %v628_v11 = vmul.f32 %v626_v10, %v622_v7 }
 0xeb9   :  { %v631_v8 = vpop.permute.xlu0 %630 }
 0xeba   :  { %v633_v36 = vmul.f32 %v631_v8, %v622_v7 }
 0xebc   :  { %635 = vrot.lane.b32.xlu1 %v633_v36, %s1259_s3 }
 0xf2e   :  { %v636_v12 = vpop.permute.xlu1 %635 }
 0xf2f   :  { %v638_v13 = vadd.f32 %v636_v12, %v628_v11 }
 0xf31   :  { %1132 = vtanh.f32 %v638_v13  ;;  %v701_v40 = vrot.slane %v638_v13, 6 }
 0xf37   :  { %v1133_v14 = vpop.eup %1132 }
 0xf38   :  { %641 = vrot.lane.b32.xlu2 %v1133_v14, %s1258_s29 }
 0xf92   :  { %v642_v15 = vpop.permute.xlu2 %641 }
 0xf93   :  { %v644_v16 = vmul.f32 %v642_v15, %v622_v7 }
 0xf95   :  { %v651_v17 = vrot.slane %v644_v16, 4 }
 0xf97   :  { %652 = vrot.lane.b32.xlu0 %v651_v17, %s1259_s3 }
0x1009   :  { %v653_v18 = vpop.permute.xlu0 %652 }
0x100a   :  { %1047 = vmatmul.msk.f32.vlgmr.msra.gmra.mxu1 %vm134_vm7, %v653_v18 }
0x1087   :  { %v673_v19 = vpop.f32.mrf.mxu1 }
0x1088   :  { %v677_v20 = vrot.slane %v673_v19, 2 }
0x108a   :  { %v679_v21 = vadd.f32 %v677_v20, %v1448_v59 }
0x108c   :  { %1134 = vtanh.f32 %v679_v21  ;;  %v1048_v23 = vmul.f32 -1.442695, %v679_v21 }
0x108e   :  { %1136 = vpow2.f32 %v1048_v23 }
0x1092   :  { %v1135_v22 = vpop.eup %1134 }
0x1093   :  { %705 = vrot.lane.b32.xlu1 %v1135_v22, %s1258_s29 }
0x1094   :  { %v1137_v24 = vpop.eup %1136 }
0x1095   :  { %v683_v25 = vadd.f32 1.0, %v1137_v24 }
0x1097   :  { %1138 = vrcp.f32 %v683_v25  ;;  %v695_v59 = vand.u32 2147483648, %v683_v25  ;;  %vm689_vm3 = vweird.f32 %v683_v25  ;;  %v693_v32 = vand.u32 2147483647, %v683_v25 }
0x1099   :  { %v696_v34 = vor.u32 1.1754944e-38, %v695_v59  ;;  %vm694_vm5 = vcmp.eq.f32.partialorder %v693_v32, 8.507059e+37 }
0x109b   :  { %271 = vrot.lane.b32.xlu1 %v1423_v62, %s1259_s3 }
0x109d   :  { %v1139_v26 = vpop.eup %1138 }
0x109e   :  { %v685_v27 = vmul.f32 %v1139_v26, %v683_v25  ;;  %vm690_vm2 = vweird.f32 %v1139_v26 }
0x109f   :  { %vm691_vm4 = vmor %vm689_vm3, %vm690_vm2 }
0x10a0   :  { %v686_v29 = vsub.f32 1.0, %v685_v27 }
0x10a2   :  { %v687_v30 = vmul.f32 %v1139_v26, %v686_v29 }
0x10a3   :  { %571 = vrot.lane.b32.xlu1 %v569_v49, %s1259_s3 }
0x10a4   :  { %v688_v31 = vadd.f32 %v1139_v26, %v687_v30 }
0x10a6   :  { %v692_v33 = vsel %vm691_vm4, %v1139_v26, %v688_v31 }
0x10a7   :  { %v697_v35 = vsel %vm694_vm5, %v696_v34, %v692_v33 }
0x10a8   :  { %v703_v41 = vmul.f32 %v701_v40, %v697_v35  ;;  %v1261_v40 = vmov 1  }
0x10a9   :  { %1069 = vset.pattern.permute.xlu2 %v1261_v40 }
0x1105   :  { %v706_v62 = vpop.permute.xlu1 %705 }
0x1106   :  { %v708_v37 = vmul.f32 %v706_v62, %v697_v35 }
0x1108   :  { %710 = vrot.lane.b32.xlu2 %v708_v37, %s1259_s3 }
0x110d   :  { %v272_v38 = vpop.permute.xlu1 %271 }
0x110e   :  { %275 = vst.msk [vmem:[#allocation2 - $0x1] sm:$0x4] %vm274_vm9, %v272_v38 }
0x110f   :  { %277 = vst.msk [vmem:[#allocation2 + $0x6] sm:$0x8] %vm276_vm10, %v272_v38 }
0x1110   :  { %348 = vrot.lane.b32.xlu2 %v1432_v28, %s1259_s3  ;;  %v731_v28 = vld [vmem:[#allocation3 + $0x18] sm:$0xff] }
0x1111   :  { %753 = vmatpush.msrb.mxu2 %v731_v28 }
0x1113   :  { %754 = vmatpush.msrb.mxu2 %v730_v46 }
0x1115   :  { %v572_v39 = vpop.permute.xlu1 %571  ;;  %755 = vmatpush.msrb.mxu2 %v729_v47 }
0x1116   :  { %574 = vst.msk [vmem:[#allocation2 + $0x3] sm:$0x4] %vm274_vm9, %v572_v39 }
0x1117   :  { %575 = vst.msk [vmem:[#allocation2 + $0xa] sm:$0x8] %vm276_vm10, %v572_v39  ;;  %756 = vmatpush.msrb.mxu2 %v728_v52 }
0x1118   :  { %646 = vrot.lane.b32.xlu2 %v644_v16, %s1259_s3 }
0x1162   :  { %v711_v42 = vpop.permute.xlu2 %710 }
0x1163   :  { %v713_v43 = vadd.f32 %v711_v42, %v703_v41  ;;  %v1262_v41 = vmov 0  }
0x1164   :  { %1068 = vset.pattern.permute.xlu1 %v1262_v41  ;;  %1070 = vset.pattern.permute.xlu0 %v1262_v41 }
0x1165   :  { %1140 = vtanh.f32 %v713_v43 }
0x116a   :  { %v349_v44 = vpop.permute.xlu2 %348 }
0x116b   :  { %v1141_v45 = vpop.eup %1140  ;;  %352 = vst.msk [vmem:[#allocation2 - $0x2] sm:$0x10] %vm351_vm11, %v349_v44 }
0x116c   :  { %354 = vst.msk [vmem:[#allocation2 + $0x5] sm:$0x20] %vm353_vm6, %v349_v44  ;;  %716 = vrot.lane.b32.xlu0 %v1141_v45, %s1258_s29 }
0x1172   :  { %v647_v9 = vpop.permute.xlu2 %646 }
0x1173   :  { %649 = vst.msk [vmem:[#allocation2 + $0x2] sm:$0x10] %vm351_vm11, %v647_v9  ;;  %vm895_vm11 = vcmask 261248  }
0x1174   :  { %650 = vst.msk [vmem:[#allocation2 + $0x9] sm:$0x20] %vm353_vm6, %v647_v9  ;;  %425 = vrot.lane.b32.xlu0 %v1441_v56, %s1259_s3  ;;  %v764_v56 = vld [vmem:[#allocation6 + $0x18] sm:$0xff]  ;;  %vm978_vm6 = vcmask 1040384  }
0x1175   :  { %787 = vmatpush.msra.mxu3 %v764_v56 }
0x1177   :  { %788 = vmatpush.msra.mxu3 %v763_v54 }
0x1179   :  { %789 = vmatpush.msra.mxu3 %v762_v57 }
0x117b   :  { %790 = vmatpush.msra.mxu3 %v761_v60 }
0x11de   :  { %v717_v48 = vpop.permute.xlu0 %716 }
0x11df   :  { %v719_v49 = vmul.f32 %v717_v48, %v697_v35 }
0x11e1   :  { %v736_v50 = vrot.slane %v719_v49, 6  ;;  %721 = vrot.lane.b32.xlu0 %v719_v49, %s1259_s3 }
0x11e3   :  { %737 = vrot.lane.b32.xlu1 %v736_v50, %s1259_s3 }
0x11e6   :  { %v426_v51 = vpop.permute.xlu0 %425 }
0x11e7   :  { %429 = vst.msk [vmem:[#allocation2 - $0x3] sm:$0x40] %vm428_vm8, %v426_v51 }
0x11e8   :  { %431 = vst.msk [vmem:[#allocation2 + $0x4] sm:$0x80] %vm430_vm12, %v426_v51 }
0x1253   :  { %v722_v63 = vpop.permute.xlu0 %721 }
0x1254   :  { %724 = vst.msk [vmem:[#allocation2 + $0x1] sm:$0x40] %vm428_vm8, %v722_v63  ;;  %vm1011_vm8 = vcmask 17408  }
0x1255   :  { %725 = vst.msk [vmem:[#allocation2 + $0x8] sm:$0x80] %vm430_vm12, %v722_v63  ;;  %v738_v0 = vpop.permute.xlu1 %737 }
0x1256   :  { %1049 = vmatmul.msk.f32.vlgmr.msrb.gmra.mxu2 %vm134_vm7, %v738_v0 }
0x125b   :  { %v726_v1 = vld [vmem:[#allocation2] sm:$0xff] }
0x125c   :  { %1050 = vmatmul.msk.f32.vlgmr.msra.gmra.mxu3 %vm134_vm7, %v726_v1  ;;  %1052 = vmatmul.msk.f32.vlgmr.msra.gmra.mxu0 %vm134_vm7, %v726_v1  ;;  %v727_v2 = vld [vmem:[#allocation2 + $0x8] sm:$0xff] }
0x1264   :  { %1051 = vmatmul.msk.f32.gmra.mxu3 %vm134_vm7, %v727_v2  ;;  %1053 = vmatmul.msk.f32.gmra.mxu0 %vm134_vm7, %v727_v2 }
0x12d9   :  { %v758_v4 = vpop.f32.mrf.mxu2 }
0x12da   :  { %v759_v5 = vadd.f32 %v1074_v3, %v758_v4 }
0x12dc   :  { %v829_v7 = vperm.slane %v759_v5, 0  ;;  %v904_v12 = vperm.slane %v759_v5, 1 }
0x12df   :  { %v792_v8 = vpop.f32.mrf.mxu3 }
0x12e0   :  { %v793_v36 = vadd.f32 %v1076_v6, %v792_v8 }
0x12e2   :  { %v830_v10 = vmul.f32 %v829_v7, %v793_v36 }
0x12e4   :  { %836 = vrot.lane.b32.xlu0 %v830_v10, %s1260_s17  ;;  %v832_v16 = vsel %vm831_vm13, %v830_v10, 0.0 }
0x12e7   :  { %v795_v11 = vpop.f32.mrf.mxu3 }
0x12e8   :  { %v796_v13 = vadd.f32 %v1076_v6, %v795_v11 }
0x12ea   :  { %v905_v14 = vmul.f32 %v904_v12, %v796_v13 }
0x12ec   :  { %910 = vrot.lane.b32.xlu2 %v905_v14, %s1260_s17  ;;  %v906_v15 = vsel %vm831_vm13, %v905_v14, 0.0 }
0x12ed   :  { %907 = vadd.xlane.f32.xlu1 %v906_v15 }
0x130e   :  { %833 = vadd.xlane.f32.xlu0 %v832_v16 }
0x1346   :  { %v911_v17 = vpop.permute.xlu2 %910 }
0x1347   :  { %v913_v18 = vsel %vm831_vm13, %v911_v17, 0.0 }
0x1348   :  { %914 = vadd.xlane.f32.xlu2 %v913_v18 }
0x1356   :  { %v837_v19 = vpop.permute.xlu0 %836 }
0x1357   :  { %v839_v20 = vsel %vm831_vm13, %v837_v19, 0.0 }
0x1358   :  { %840 = vadd.xlane.f32.xlu2 %v839_v20 }
0x1360   :  { %v908_v21 = vpop.xlane.xlu1 %907 }
0x1381   :  { %v834_v32 = vpop.xlane.xlu0 %833 }
0x13bb   :  { %v915_v22 = vpop.xlane.xlu2 %914 }
0x13bc   :  { %v916_v23 = vsel %vm842_vm14, %v908_v21, %v915_v22  ;;  %v823_v21 = vpop.f32.mrf.mxu0 }
0x13bd   :  { %v917_v24 = vsel %vm844_vm15, %v916_v23, -inf }
0x13be   :  { %v918_v25 = vrot.slane %v917_v24, 4 }
0x13c0   :  { %v919_v26 = vmax.f32 %v917_v24, %v918_v25  ;;  %v983_v24 = vld [vmem:[%s1550_s10 + $0x18] sm:$0xff] }
0x13c1   :  { %1003 = vmatpush.msrb.mxu1 %v983_v24 }
0x13c2   :  { %v920_v27 = vrot.slane %v919_v26, 2 }
0x13c4   :  { %v921_v29 = vmax.f32 %v919_v26, %v920_v27  ;;  %v826_v22 = vpop.f32.mrf.mxu0  ;;  %v982_v27 = vld [vmem:[%s1550_s10 + $0x10] sm:$0xff] }
0x13c5   :  { %1004 = vmatpush.msrb.mxu1 %v982_v27 }
0x13c6   :  { %v922_v30 = vrot.slane %v921_v29, 1 }
0x13c8   :  { %v923_v31 = vmax.f32 %v921_v29, %v922_v30  ;;  %v981_v29 = vld [vmem:[%s1550_s10 + $0x8] sm:$0xff] }
0x13c9   :  { %1005 = vmatpush.msrb.mxu1 %v981_v29 }
0x13ca   :  { %v924_v59 = vsub.f32 %v916_v23, %v923_v31  ;;  %v1075_v23 = vld [vmem:[%s1549_s9] ss:$0 sm:$0xff] }
0x13cb   :  { %v841_v33 = vpop.xlane.xlu2 %840  ;;  %v827_v26 = vadd.f32 %v1075_v23, %v826_v22  ;;  %v980_v31 = vld [vmem:[%s1550_s10] sm:$0xff]  ;;  %v824_v41 = vadd.f32 %v1075_v23, %v823_v21 }
0x13cc   :  { %v925_v34 = vmul.f32 1.442695, %v924_v59  ;;  %v843_v62 = vsel %vm842_vm14, %v834_v32, %v841_v33  ;;  %1006 = vmatpush.msrb.mxu1 %v980_v31 }
0x13cd   :  { %v845_v35 = vsel %vm844_vm15, %v843_v62, -inf }
0x13ce   :  { %1142 = vpow2.f32 %v925_v34  ;;  %v846_v37 = vrot.slane %v845_v35, 4 }
0x13d0   :  { %v847_v38 = vmax.f32 %v845_v35, %v846_v37 }
0x13d2   :  { %v848_v39 = vrot.slane %v847_v38, 2 }
0x13d4   :  { %v1143_v42 = vpop.eup %1142  ;;  %v849_v43 = vmax.f32 %v847_v38, %v848_v39 }
0x13d5   :  { %v927_v44 = vsel %vm844_vm15, %v1143_v42, 0.0 }
0x13d6   :  { %v928_v45 = vrot.slane %v927_v44, 4  ;;  %v850_v9 = vrot.slane %v849_v43, 1 }
0x13d8   :  { %v929_v28 = vadd.f32 %v928_v45, %v927_v44  ;;  %v851_v46 = vmax.f32 %v849_v43, %v850_v9 }
0x13da   :  { %v930_v47 = vrot.slane %v929_v28, 2  ;;  %v852_v48 = vsub.f32 %v843_v62, %v851_v46 }
0x13dc   :  { %v931_v49 = vadd.f32 %v930_v47, %v929_v28  ;;  %v853_v50 = vmul.f32 1.442695, %v852_v48 }
0x13de   :  { %v932_v51 = vrot.slane %v931_v49, 1  ;;  %1144 = vpow2.f32 %v853_v50 }
0x13e0   :  { %v933_v56 = vadd.f32 %v932_v51, %v931_v49 }
0x13e2   :  { %1146 = vrcp.f32 %v933_v56  ;;  %v945_v0 = vand.u32 2147483648, %v933_v56  ;;  %v943_v2 = vand.u32 2147483647, %v933_v56  ;;  %vm939_vm1 = vweird.f32 %v933_v56 }
0x13e4   :  { %v1145_v52 = vpop.eup %1144  ;;  %v946_v6 = vor.u32 1.1754944e-38, %v945_v0  ;;  %vm944_vm3 = vcmp.eq.f32.partialorder %v943_v2, 8.507059e+37 }
0x13e5   :  { %v855_v53 = vsel %vm844_vm15, %v1145_v52, 0.0 }
0x13e6   :  { %v856_v54 = vrot.slane %v855_v53, 4 }
0x13e8   :  { %v1147_v55 = vpop.eup %1146  ;;  %v857_v57 = vadd.f32 %v856_v54, %v855_v53 }
0x13e9   :  { %v935_v58 = vmul.f32 %v1147_v55, %v933_v56  ;;  %vm940_vm0 = vweird.f32 %v1147_v55 }
0x13ea   :  { %v858_v60 = vrot.slane %v857_v57, 2  ;;  %vm941_vm2 = vmor %vm939_vm1, %vm940_vm0 }
0x13eb   :  { %v936_v61 = vsub.f32 1.0, %v935_v58 }
0x13ec   :  { %v859_v63 = vadd.f32 %v858_v60, %v857_v57 }
0x13ed   :  { %v937_v1 = vmul.f32 %v1147_v55, %v936_v61 }
0x13ee   :  { %v860_v3 = vrot.slane %v859_v63, 1 }
0x13ef   :  { %v938_v4 = vadd.f32 %v1147_v55, %v937_v1 }
0x13f0   :  { %v861_v5 = vadd.f32 %v860_v3, %v859_v63 }
0x13f1   :  { %v942_v8 = vsel %vm941_vm2, %v1147_v55, %v938_v4 }
0x13f2   :  { %1148 = vrcp.f32 %v861_v5  ;;  %v947_v7 = vsel %vm944_vm3, %v946_v6, %v942_v8  ;;  %v873_v13 = vand.u32 2147483648, %v861_v5  ;;  %v871_v15 = vand.u32 2147483647, %v861_v5  ;;  %v1077_v6 = vld [vmem:[%s1551_s11] ss:$0 sm:$0xff] }
0x13f3   :  { %v948_v36 = vmul.f32 %v1143_v42, %v947_v7  ;;  %vm867_vm5 = vweird.f32 %v861_v5 }
0x13f4   :  { %v874_v17 = vor.u32 1.1754944e-38, %v873_v13  ;;  %vm872_vm10 = vcmp.eq.f32.partialorder %v871_v15, 8.507059e+37 }
0x13f5   :  { %951 = vperm.xlu1 %1068, %v948_v36   ;;  %963 = vperm.xlu2 %1069, %v948_v36  }
0x13f8   :  { %v1149_v10 = vpop.eup %1148 }
0x13f9   :  { %v863_v11 = vmul.f32 %v1149_v10, %v861_v5  ;;  %vm868_vm4 = vweird.f32 %v1149_v10 }
0x13fa   :  { %vm869_vm9 = vmor %vm867_vm5, %vm868_vm4 }
0x13fb   :  { %v864_v12 = vsub.f32 1.0, %v863_v11 }
0x13fd   :  { %1071 = vset.pattern.permute.xlu1 %v1261_v40  ;;  %v865_v14 = vmul.f32 %v1149_v10, %v864_v12 }
0x13ff   :  { %v866_v16 = vadd.f32 %v1149_v10, %v865_v14 }
0x1401   :  { %v870_v18 = vsel %vm869_vm9, %v1149_v10, %v866_v16 }
0x1402   :  { %v875_v19 = vsel %vm872_vm10, %v874_v17, %v870_v18 }
0x1403   :  { %v876_v20 = vmul.f32 %v1145_v52, %v875_v19 }
0x1405   :  { %891 = vperm.xlu1 %1071, %v876_v20   ;;  %879 = vperm.xlu0 %1070, %v876_v20  }
0x140d   :  { %1072 = vset.pattern.permute.xlu0 %v1261_v40 }
0x144f   :  { %v964_v25 = vpop.permute.xlu2 %963 }
0x1450   :  { %v966_v30 = vmul.f32 %v964_v25, %v827_v26 }
0x1452   :  { %v967_v33 = vsel %vm895_vm11, %v966_v30, 0.0 }
0x1453   :  { %v968_v35 = vrot.slane %v967_v33, 4 }
0x1455   :  { %v969_v38 = vadd.f32 %v968_v35, %v967_v33 }
0x1457   :  { %v970_v40 = vrot.slane %v969_v38, 2 }
0x1459   :  { %v971_v28 = vadd.f32 %v970_v40, %v969_v38 }
0x145b   :  { %v972_v51 = vrot.slane %v971_v28, 1 }
0x145d   :  { %v973_v57 = vadd.f32 %v972_v51, %v971_v28 }
0x1467   :  { %v952_v59 = vpop.permute.xlu1 %951 }
0x1468   :  { %v954_v32 = vmul.f32 %v952_v59, %v827_v26 }
0x146a   :  { %v955_v34 = vsel %vm831_vm13, %v954_v32, 0.0 }
0x146b   :  { %v956_v62 = vrot.slane %v955_v34, 4 }
0x146d   :  { %v957_v37 = vadd.f32 %v956_v62, %v955_v34 }
0x146f   :  { %v958_v39 = vrot.slane %v957_v37, 2 }
0x1471   :  { %v959_v42 = vadd.f32 %v958_v39, %v957_v37 }
0x1473   :  { %v960_v48 = vrot.slane %v959_v42, 1 }
0x1475   :  { %v961_v53 = vadd.f32 %v960_v48, %v959_v42 }
0x1477   :  { %v892_v43 = vpop.permute.xlu1 %891  ;;  %v880_v44 = vpop.permute.xlu0 %879  ;;  %v974_v0 = vsel %vm831_vm13, %v961_v53, %v973_v57 }
0x1478   :  { %v894_v45 = vmul.f32 %v892_v43, %v824_v41  ;;  %v882_v9 = vmul.f32 %v880_v44, %v824_v41  ;;  %v976_v3 = vrot.slane %v974_v0, 7 }
0x147a   :  { %v896_v46 = vsel %vm895_vm11, %v894_v45, 0.0  ;;  %v883_v47 = vsel %vm831_vm13, %v882_v9, 0.0 }
0x147b   :  { %v897_v49 = vrot.slane %v896_v46, 4  ;;  %v884_v50 = vrot.slane %v883_v47, 4 }
0x147d   :  { %v898_v56 = vadd.f32 %v897_v49, %v896_v46  ;;  %v885_v52 = vadd.f32 %v884_v50, %v883_v47 }
0x147f   :  { %v899_v54 = vrot.slane %v898_v56, 2  ;;  %v886_v55 = vrot.slane %v885_v52, 2 }
0x1481   :  { %v900_v58 = vadd.f32 %v899_v54, %v898_v56  ;;  %v887_v60 = vadd.f32 %v886_v55, %v885_v52 }
0x1483   :  { %v901_v61 = vrot.slane %v900_v58, 1  ;;  %v888_v63 = vrot.slane %v887_v60, 1 }
0x1485   :  { %v902_v1 = vadd.f32 %v901_v61, %v900_v58  ;;  %v889_v2 = vadd.f32 %v888_v63, %v887_v60 }
0x1487   :  { %v903_v4 = vsel %vm831_vm13, %v889_v2, %v902_v1 }
0x1488   :  { %v979_v5 = vsel %vm978_vm6, %v903_v4, %v976_v3 }
0x1489   :  { %1054 = vmatmul.msk.f32.vlgmr.msrb.gmra.mxu1 %vm134_vm7, %v979_v5 }
0x1506   :  { %v1008_v8 = vpop.f32.mrf.mxu1 }
0x1507   :  { %v1009_v7 = vadd.f32 %v1077_v6, %v1008_v8 }
0x1509   :  { %1012 = vst.msk [vmem:[#allocation9] sm:$0x3] %vm1011_vm8, %v1009_v7 }
0x150a   :  { %1023 = dma.vmem_to_hbm [thread:$0]  %s1019_s24, 32, %s1021_s1, [#allocation5]  }
0x150b   :  { %1250 = dma.done.wait [#allocation5], 32  }
0x150c   :  { %1251 = vsyncadd [#allocation5], 4294967264 }
0x150d   :  { %1028 = vsyncpa [#allocation4], 1 }
0x150e   :  { %1029 = vsyncpa [#allocation7], 1 }
0x150f   :  { %1030 = vsyncpa [#allocation5], 1 }

</bundles_post_ra>
